<compile_context>
chip_gen: v7x
topology: tpu7x:2x2x1
jax: 0.10.0
libtpu: 0.0.40
codegen_flags: <defaults>
</compile_context>

<pallas_src>
import functools

import jax
import jax.numpy as jnp
from jax.experimental import pallas as pl
from jax.experimental.pallas import tpu as pltpu


# -----------------------------------------------------------------------------
# Kernel
# -----------------------------------------------------------------------------
def dae_zinb_kernel(
    x_ref, sf_ref,
    w1_ref, b1_ref, w2_ref, b2_ref, w3_ref, b3_ref,      # fc_encoder (lane-padded)
    w4_ref, b4_ref, w5_ref, b5_ref,                      # fc_decoder (lane-padded)
    wh_ref, bh_ref,                                      # fused heads [h1_pad, 3*in_pad]
    emb_ref, normx_ref, dropr_ref, disp_ref, scalex_ref,  # outputs (all lane-dense)
    *, in_pad,
):
    def lin(h, w_ref, b_ref):
        # bf16 matmul inputs on the MXU, f32 accumulation + f32 bias.
        return jnp.dot(h.astype(w_ref.dtype), w_ref[...],
                       preferred_element_type=jnp.float32) + b_ref[...]

    relu = lambda v: jnp.maximum(v, 0.0)

    x = x_ref[...]

    # ---- encoder: in_pad -> h1_pad -> h2_pad -> z_pad (ReLU each) ----
    h = relu(lin(x, w1_ref, b1_ref))
    h = relu(lin(h, w2_ref, b2_ref))
    emb = relu(lin(h, w3_ref, b3_ref))        # padded cols are exactly 0
    emb_ref[...] = emb                        # lane-dense (z_pad % 128 == 0)

    # ---- decoder: z_pad -> h2_pad -> h1_pad (ReLU each) ----
    h = relu(lin(emb, w4_ref, b4_ref))
    latent = relu(lin(h, w5_ref, b5_ref))

    # ---- fused heads: one long-N MXU push, lane-aligned slices ----
    heads = lin(latent, wh_ref, bh_ref)       # [tb, 3*in_pad] f32

    # Store the two simple heads immediately (ends their live ranges early).
    dropr_ref[...] = heads[:, 2 * in_pad:3 * in_pad]          # dropout head
    disp_ref[...] = jnp.exp(heads[:, 1 * in_pad:2 * in_pad])  # disper_x = exp(r)

    # ---- normalized_x = softmax(scale logits, dim=1) ----
    # Padded logit columns carry a -1e30 bias so they vanish from the softmax.
    logits = heads[:, 0 * in_pad:1 * in_pad]
    m = jnp.max(logits, axis=-1, keepdims=True)
    e = jnp.exp(logits - m)
    inv_sum = pl.reciprocal(jnp.sum(e, axis=-1, keepdims=True), approx=False)
    normx = e * inv_sum
    normx_ref[...] = normx

    # ---- scale_x = exp(scale_factor) * normalized_x ----
    scalex_ref[...] = jnp.exp(sf_ref[...]) * normx


# -----------------------------------------------------------------------------
# Host-side parameter construction / packing
# -----------------------------------------------------------------------------
def make_params(key, in_dim, hidden1, hidden2, z_emb_size):
    """Deterministic PyTorch-Linear-style (uniform) init. W stored [in, out], f32."""
    dims = [
        (in_dim, hidden1), (hidden1, hidden2), (hidden2, z_emb_size),   # encoder
        (z_emb_size, hidden2), (hidden2, hidden1),                      # decoder
        (hidden1, in_dim), (hidden1, in_dim), (hidden1, in_dim),        # scale, r, dropout
    ]
    params = []
    for (fan_in, fan_out) in dims:
        key, kw, kb = jax.random.split(key, 3)
        bound = 1.0 / (fan_in ** 0.5)
        w = jax.random.uniform(kw, (fan_in, fan_out), jnp.float32, -bound, bound)
        b = jax.random.uniform(kb, (1, fan_out), jnp.float32, -bound, bound)
        params += [w, b]
    return params


def _round_up(n, m):
    return ((n + m - 1) // m) * m


_NEG_BIAS = -1e30  # softmax masking value for padded logit columns


def pack_params(params):
    """bf16 weights / f32 biases, every feature dim padded to a lane multiple,
    three heads fused into one wide matmul."""
    (w1, b1, w2, b2, w3, b3, w4, b4, w5, b5, ws, bs, wr, br, wd, bd) = params
    in_dim, h1 = w1.shape
    h2 = w2.shape[1]
    z_emb = w3.shape[1]

    in_pad = _round_up(in_dim, 128)
    h1_pad = _round_up(h1, 128)
    h2_pad = _round_up(h2, 128)
    z_pad = _round_up(z_emb, 128)

    def padw(w, rows, cols):
        out = jnp.zeros((rows, cols), jnp.float32)
        return out.at[: w.shape[0], : w.shape[1]].set(w)

    def padb(b, cols, fill=0.0):
        out = jnp.full((1, cols), fill, jnp.float32)
        return out.at[:, : b.shape[1]].set(b)

    bf = lambda a: a.astype(jnp.bfloat16)

    # Fused heads: [scale | r | dropout].  Padded scale-bias columns get -1e30
    # so they contribute nothing to the softmax denominator.
    wh = jnp.concatenate(
        [padw(ws, h1_pad, in_pad), padw(wr, h1_pad, in_pad), padw(wd, h1_pad, in_pad)],
        axis=1)
    bh = jnp.concatenate(
        [padb(bs, in_pad, _NEG_BIAS), padb(br, in_pad), padb(bd, in_pad)], axis=1)

    packed = (
        bf(padw(w1, in_pad, h1_pad)), padb(b1, h1_pad),
        bf(padw(w2, h1_pad, h2_pad)), padb(b2, h2_pad),
        bf(padw(w3, h2_pad, z_pad)), padb(b3, z_pad),
        bf(padw(w4, z_pad, h2_pad)), padb(b4, h2_pad),
        bf(padw(w5, h2_pad, h1_pad)), padb(b5, h1_pad),
        bf(wh), bh,
    )
    dims = dict(in_dim=in_dim, in_pad=in_pad, z_emb=z_emb, z_pad=z_pad,
                h1_pad=h1_pad, h2_pad=h2_pad)
    return packed, dims


# -----------------------------------------------------------------------------
# VMEM-budget-derived tiling
# -----------------------------------------------------------------------------
def _vmem_capacity_bytes():
    try:
        info = pltpu.get_tpu_info()
        cap = getattr(info, "vmem_capacity_bytes", None)
        if cap:
            return int(cap)
    except Exception:
        pass
    return 64 << 20  # conservative default (v7x has 64 MiB/TC)


def _choose_tile_b(B, weight_bytes, per_row_bytes, budget_bytes):
    """Largest sublane-friendly batch tile that fits the VMEM budget.
    Capped at 256 rows (MXU M-dim is saturated well before that on all chips)."""
    need = _round_up(max(B, 16), 16)
    for cand in (256, 128, 64, 32, 16):
        if cand > need:
            continue
        if weight_bytes + cand * per_row_bytes <= budget_bytes:
            return cand
    return 16


# -----------------------------------------------------------------------------
# pallas_call wrapper
# -----------------------------------------------------------------------------
@functools.partial(
    jax.jit,
    static_argnames=("in_dim", "in_pad", "z_emb", "z_pad", "h1_pad", "h2_pad",
                     "single_buffer"))
def _dae_zinb_call(x_bf, scale_factor, packed, *, in_dim, in_pad, z_emb, z_pad,
                   h1_pad, h2_pad, single_buffer):
    B = x_bf.shape[0]

    # ---- VMEM budget -> batch tile + vmem limit ----
    weight_bytes = sum(int(p.size) * p.dtype.itemsize for p in packed)
    if not single_buffer:
        weight_bytes *= 2  # default pipeline double-buffers even constant blocks
    # Pipelined per-row I/O tiles (double-buffered) + rough in-kernel live slabs.
    io_row = in_pad * 2 + 4 + z_pad * 4 + 4 * in_pad * 4
    scratch_row = (5 * in_pad + h1_pad + 2 * h2_pad + z_pad) * 4
    per_row = 2 * io_row + scratch_row

    phys = _vmem_capacity_bytes()
    vmem_limit = max(min(phys - (8 << 20), 100 << 20), 32 << 20)
    tile_b = _choose_tile_b(B, weight_bytes, per_row, vmem_limit - (4 << 20))

    # ---- pad batch to a whole number of tiles (sublane-aligned, cdiv grid) ----
    B_pad = _round_up(B, tile_b)
    if B_pad != B:
        x_bf = jnp.pad(x_bf, ((0, B_pad - B), (0, 0)))
        scale_factor = jnp.pad(scale_factor, ((0, B_pad - B), (0, 0)))
    grid = (B_pad // tile_b,)

    def batch_spec(feat):
        return pl.BlockSpec((tile_b, feat), lambda i: (i, 0))

    def full_spec(arr):
        # Constant index_map -> block is resident across all grid steps.
        idx = lambda i: (0, 0)
        if single_buffer:
            # Never re-fetched, so a single buffer halves weight VMEM footprint.
            return pl.BlockSpec(arr.shape, idx, pipeline_mode=pl.Buffered(1))
        return pl.BlockSpec(arr.shape, idx)

    in_specs = [batch_spec(in_pad), batch_spec(1)] + [full_spec(p) for p in packed]

    out_shapes = (
        jax.ShapeDtypeStruct((B_pad, z_pad), jnp.float32),   # emb
        jax.ShapeDtypeStruct((B_pad, in_pad), jnp.float32),  # normalized_x
        jax.ShapeDtypeStruct((B_pad, in_pad), jnp.float32),  # dropout_rate
        jax.ShapeDtypeStruct((B_pad, in_pad), jnp.float32),  # disper_x
        jax.ShapeDtypeStruct((B_pad, in_pad), jnp.float32),  # scale_x
    )
    out_specs = (batch_spec(z_pad), batch_spec(in_pad), batch_spec(in_pad),
                 batch_spec(in_pad), batch_spec(in_pad))

    # ---- advisory cost estimate for the XLA scheduler ----
    flops = 2 * B_pad * (in_pad * h1_pad + h1_pad * h2_pad + h2_pad * z_pad
                         + z_pad * h2_pad + h2_pad * h1_pad + h1_pad * 3 * in_pad)
    transcendentals = B_pad * (2 * in_pad + 2)
    bytes_accessed = weight_bytes + B_pad * (in_pad * 2 + 4 + (z_pad + 4 * in_pad) * 4)
    cost = pl.CostEstimate(flops=int(flops), transcendentals=int(transcendentals),
                           bytes_accessed=int(bytes_accessed))

    kernel = functools.partial(dae_zinb_kernel, in_pad=in_pad)

    emb, normx, dropr, disp, scalex = pl.pallas_call(
        kernel,
        out_shape=out_shapes,
        grid_spec=pltpu.PrefetchScalarGridSpec(
            num_scalar_prefetch=0,
            grid=grid,
            in_specs=in_specs,
            out_specs=out_specs,
        ),
        compiler_params=pltpu.CompilerParams(
            dimension_semantics=("parallel",),
            vmem_limit_bytes=int(vmem_limit),
        ),
        cost_estimate=cost,
    )(x_bf, scale_factor, *packed)

    def trim(a, rows, cols):
        if a.shape[0] != rows:
            a = a[:rows]
        if a.shape[1] != cols:
            a = a[:, :cols]
        return a

    emb = trim(emb, B, z_emb)
    normx = trim(normx, B, in_dim)
    dropr = trim(dropr, B, in_dim)
    disp = trim(disp, B, in_dim)
    scalex = trim(scalex, B, in_dim)
    return emb, normx, dropr, disp, scalex


_SINGLE_BUFFER_WEIGHTS = True  # flipped to False if pl.Buffered(1) is unsupported


def dae_zinb_forward(x, scale_factor, params):
    global _SINGLE_BUFFER_WEIGHTS
    packed, dims = pack_params(params)
    B, in_dim = x.shape
    assert in_dim == dims["in_dim"]
    if dims["in_pad"] != in_dim:
        x = jnp.pad(x, ((0, 0), (0, dims["in_pad"] - in_dim)))
    x_bf = x.astype(jnp.bfloat16)
    try:
        return _dae_zinb_call(x_bf, scale_factor, packed,
                              single_buffer=_SINGLE_BUFFER_WEIGHTS, **dims)
    except Exception:
        if not _SINGLE_BUFFER_WEIGHTS:
            raise
        # pipeline_mode=pl.Buffered(1) not supported on this jax build: fall back
        # to default (double-buffered, still resident) weight blocks.
        _SINGLE_BUFFER_WEIGHTS = False
        return _dae_zinb_call(x_bf, scale_factor, packed,
                              single_buffer=False, **dims)


# -----------------------------------------------------------------------------
# Pure-JAX reference (same bf16 matmul inputs / f32 accumulation as the kernel)
# -----------------------------------------------------------------------------
def reference_forward(x, scale_factor, params):
    (w1, b1, w2, b2, w3, b3, w4, b4, w5, b5, ws, bs, wr, br, wd, bd) = params
    bf = lambda a: a.astype(jnp.bfloat16)
    lin = lambda h, w, b: jnp.dot(bf(h), bf(w), preferred_element_type=jnp.float32) + b
    relu = lambda v: jnp.maximum(v, 0.0)

    h = relu(lin(x, w1, b1))
    h = relu(lin(h, w2, b2))
    emb = relu(lin(h, w3, b3))
    h = relu(lin(emb, w4, b4))
    latent = relu(lin(h, w5, b5))
    normx = jax.nn.softmax(lin(latent, ws, bs), axis=1)
    disp = jnp.exp(lin(latent, wr, br))
    dropr = lin(latent, wd, bd)
    scalex = jnp.exp(scale_factor) * normx
    return emb, normx, dropr, disp, scalex


# -----------------------------------------------------------------------------
if __name__ == "__main__":
    # Small shapes consistent with the module: x is [batch, in_dim].
    B, in_dim, hidden1, hidden2, z_emb = 16, 256, 128, 64, 32

    key = jax.random.PRNGKey(0)
    kx, kp = jax.random.split(key)
    x = jax.random.normal(kx, (B, in_dim), jnp.float32)
    scale_factor = jnp.ones((B, 1), jnp.float32)   # mimics scale_factor.resize_(B, 1)
    params = make_params(kp, in_dim, hidden1, hidden2, z_emb)

    outs = dae_zinb_forward(x, scale_factor, params)
    outs = jax.block_until_ready(outs)

    refs = reference_forward(x, scale_factor, params)
    names = ["emb", "normalized_x", "dropout_rate", "disper_x", "scale_x"]
    for name, o, r in zip(names, outs, refs):
        assert o.shape == r.shape, (name, o.shape, r.shape)
        err = float(jnp.max(jnp.abs(o.astype(jnp.float32) - r.astype(jnp.float32))))
        assert err < 2e-3, (name, err)

    print("KERNEL_OK")
</pallas_src>

<mosaic_0001>
module attributes {stable_mosaic.version = 11 : i64} {
  func.func @dae_zinb_kernel(%arg0: i32, %arg1: memref<16x256xbf16, #tpu.memory_space<vmem>>, %arg2: memref<16x1xf32, #tpu.memory_space<vmem>>, %arg3: memref<256x128xbf16, #tpu.memory_space<vmem>>, %arg4: memref<1x128xf32, #tpu.memory_space<vmem>>, %arg5: memref<128x128xbf16, #tpu.memory_space<vmem>>, %arg6: memref<1x128xf32, #tpu.memory_space<vmem>>, %arg7: memref<128x128xbf16, #tpu.memory_space<vmem>>, %arg8: memref<1x128xf32, #tpu.memory_space<vmem>>, %arg9: memref<128x128xbf16, #tpu.memory_space<vmem>>, %arg10: memref<1x128xf32, #tpu.memory_space<vmem>>, %arg11: memref<128x128xbf16, #tpu.memory_space<vmem>>, %arg12: memref<1x128xf32, #tpu.memory_space<vmem>>, %arg13: memref<128x768xbf16, #tpu.memory_space<vmem>>, %arg14: memref<1x768xf32, #tpu.memory_space<vmem>>, %arg15: memref<16x128xf32, #tpu.memory_space<vmem>>, %arg16: memref<16x256xf32, #tpu.memory_space<vmem>>, %arg17: memref<16x256xf32, #tpu.memory_space<vmem>>, %arg18: memref<16x256xf32, #tpu.memory_space<vmem>>, %arg19: memref<16x256xf32, #tpu.memory_space<vmem>>) attributes {dimension_semantics = [#tpu.dimension_semantics<parallel>], iteration_bounds = array<i64: 1>, scalar_prefetch = 0 : i64, scratch_operands = 0 : i64, tpu.core_type = #tpu.core_type<tc>, window_params = [{transform_indices = @transform_0, window_bounds = array<i64: 16, 256>}, {transform_indices = @transform_1, window_bounds = array<i64: 16, 1>}, {pipeline_mode = #tpu.pipeline_mode<synchronous>, transform_indices = @transform_2, window_bounds = array<i64: 256, 128>}, {pipeline_mode = #tpu.pipeline_mode<synchronous>, transform_indices = @transform_3, window_bounds = array<i64: 1, 128>}, {pipeline_mode = #tpu.pipeline_mode<synchronous>, transform_indices = @transform_4, window_bounds = array<i64: 128, 128>}, {pipeline_mode = #tpu.pipeline_mode<synchronous>, transform_indices = @transform_5, window_bounds = array<i64: 1, 128>}, {pipeline_mode = #tpu.pipeline_mode<synchronous>, transform_indices = @transform_6, window_bounds = array<i64: 128, 128>}, {pipeline_mode = #tpu.pipeline_mode<synchronous>, transform_indices = @transform_7, window_bounds = array<i64: 1, 128>}, {pipeline_mode = #tpu.pipeline_mode<synchronous>, transform_indices = @transform_8, window_bounds = array<i64: 128, 128>}, {pipeline_mode = #tpu.pipeline_mode<synchronous>, transform_indices = @transform_9, window_bounds = array<i64: 1, 128>}, {pipeline_mode = #tpu.pipeline_mode<synchronous>, transform_indices = @transform_10, window_bounds = array<i64: 128, 128>}, {pipeline_mode = #tpu.pipeline_mode<synchronous>, transform_indices = @transform_11, window_bounds = array<i64: 1, 128>}, {pipeline_mode = #tpu.pipeline_mode<synchronous>, transform_indices = @transform_12, window_bounds = array<i64: 128, 768>}, {pipeline_mode = #tpu.pipeline_mode<synchronous>, transform_indices = @transform_13, window_bounds = array<i64: 1, 768>}, {transform_indices = @transform_14, window_bounds = array<i64: 16, 128>}, {transform_indices = @transform_15, window_bounds = array<i64: 16, 256>}, {transform_indices = @transform_16, window_bounds = array<i64: 16, 256>}, {transform_indices = @transform_17, window_bounds = array<i64: 16, 256>}, {transform_indices = @transform_18, window_bounds = array<i64: 16, 256>}]} {
    %c0 = arith.constant 0 : index
    %c0_0 = arith.constant 0 : index
    %0 = vector.load %arg1[%c0, %c0_0] : memref<16x256xbf16, #tpu.memory_space<vmem>>, vector<16x256xbf16>
    %c0_1 = arith.constant 0 : index
    %c0_2 = arith.constant 0 : index
    %1 = vector.load %arg3[%c0_1, %c0_2] : memref<256x128xbf16, #tpu.memory_space<vmem>>, vector<256x128xbf16>
    %cst = arith.constant dense<0.000000e+00> : vector<16x128xf32>
    %2 = tpu.matmul %0, %1, %cst {dimension_numbers = #tpu.dot_dimension_numbers<[1], [0], [0], [1], [0, 0, 1, 1], [], []>} : vector<16x256xbf16>, vector<256x128xbf16>, vector<16x128xf32> -> vector<16x128xf32>
    %c0_3 = arith.constant 0 : index
    %c0_4 = arith.constant 0 : index
    %3 = vector.load %arg4[%c0_3, %c0_4] : memref<1x128xf32, #tpu.memory_space<vmem>>, vector<1x128xf32>
    %4 = vector.broadcast %3 : vector<1x128xf32> to vector<16x128xf32>
    %5 = arith.addf %2, %4 : vector<16x128xf32>
    %cst_5 = arith.constant 0.000000e+00 : f32
    %6 = vector.broadcast %cst_5 : f32 to vector<16x128xf32>
    %7 = arith.maximumf %5, %6 : vector<16x128xf32>
    %8 = arith.truncf %7 : vector<16x128xf32> to vector<16x128xbf16>
    %c0_6 = arith.constant 0 : index
    %c0_7 = arith.constant 0 : index
    %9 = vector.load %arg5[%c0_6, %c0_7] : memref<128x128xbf16, #tpu.memory_space<vmem>>, vector<128x128xbf16>
    %cst_8 = arith.constant dense<0.000000e+00> : vector<16x128xf32>
    %10 = tpu.matmul %8, %9, %cst_8 {dimension_numbers = #tpu.dot_dimension_numbers<[1], [0], [0], [1], [0, 0, 1, 1], [], []>} : vector<16x128xbf16>, vector<128x128xbf16>, vector<16x128xf32> -> vector<16x128xf32>
    %c0_9 = arith.constant 0 : index
    %c0_10 = arith.constant 0 : index
    %11 = vector.load %arg6[%c0_9, %c0_10] : memref<1x128xf32, #tpu.memory_space<vmem>>, vector<1x128xf32>
    %12 = vector.broadcast %11 : vector<1x128xf32> to vector<16x128xf32>
    %13 = arith.addf %10, %12 : vector<16x128xf32>
    %cst_11 = arith.constant 0.000000e+00 : f32
    %14 = vector.broadcast %cst_11 : f32 to vector<16x128xf32>
    %15 = arith.maximumf %13, %14 : vector<16x128xf32>
    %16 = arith.truncf %15 : vector<16x128xf32> to vector<16x128xbf16>
    %c0_12 = arith.constant 0 : index
    %c0_13 = arith.constant 0 : index
    %17 = vector.load %arg7[%c0_12, %c0_13] : memref<128x128xbf16, #tpu.memory_space<vmem>>, vector<128x128xbf16>
    %cst_14 = arith.constant dense<0.000000e+00> : vector<16x128xf32>
    %18 = tpu.matmul %16, %17, %cst_14 {dimension_numbers = #tpu.dot_dimension_numbers<[1], [0], [0], [1], [0, 0, 1, 1], [], []>} : vector<16x128xbf16>, vector<128x128xbf16>, vector<16x128xf32> -> vector<16x128xf32>
    %c0_15 = arith.constant 0 : index
    %c0_16 = arith.constant 0 : index
    %19 = vector.load %arg8[%c0_15, %c0_16] : memref<1x128xf32, #tpu.memory_space<vmem>>, vector<1x128xf32>
    %20 = vector.broadcast %19 : vector<1x128xf32> to vector<16x128xf32>
    %21 = arith.addf %18, %20 : vector<16x128xf32>
    %cst_17 = arith.constant 0.000000e+00 : f32
    %22 = vector.broadcast %cst_17 : f32 to vector<16x128xf32>
    %23 = arith.maximumf %21, %22 : vector<16x128xf32>
    %c0_18 = arith.constant 0 : index
    %c0_19 = arith.constant 0 : index
    %24 = vector.load %arg15[%c0_18, %c0_19] : memref<16x128xf32, #tpu.memory_space<vmem>>, vector<16x128xf32>
    tpu.vector_store %arg15[%c0_18, %c0_19], %23 {strides = array<i32>} : memref<16x128xf32, #tpu.memory_space<vmem>>, vector<16x128xf32>,
    %25 = arith.truncf %23 : vector<16x128xf32> to vector<16x128xbf16>
    %c0_20 = arith.constant 0 : index
    %c0_21 = arith.constant 0 : index
    %26 = vector.load %arg9[%c0_20, %c0_21] : memref<128x128xbf16, #tpu.memory_space<vmem>>, vector<128x128xbf16>
    %cst_22 = arith.constant dense<0.000000e+00> : vector<16x128xf32>
    %27 = tpu.matmul %25, %26, %cst_22 {dimension_numbers = #tpu.dot_dimension_numbers<[1], [0], [0], [1], [0, 0, 1, 1], [], []>} : vector<16x128xbf16>, vector<128x128xbf16>, vector<16x128xf32> -> vector<16x128xf32>
    %c0_23 = arith.constant 0 : index
    %c0_24 = arith.constant 0 : index
    %28 = vector.load %arg10[%c0_23, %c0_24] : memref<1x128xf32, #tpu.memory_space<vmem>>, vector<1x128xf32>
    %29 = vector.broadcast %28 : vector<1x128xf32> to vector<16x128xf32>
    %30 = arith.addf %27, %29 : vector<16x128xf32>
    %cst_25 = arith.constant 0.000000e+00 : f32
    %31 = vector.broadcast %cst_25 : f32 to vector<16x128xf32>
    %32 = arith.maximumf %30, %31 : vector<16x128xf32>
    %33 = arith.truncf %32 : vector<16x128xf32> to vector<16x128xbf16>
    %c0_26 = arith.constant 0 : index
    %c0_27 = arith.constant 0 : index
    %34 = vector.load %arg11[%c0_26, %c0_27] : memref<128x128xbf16, #tpu.memory_space<vmem>>, vector<128x128xbf16>
    %cst_28 = arith.constant dense<0.000000e+00> : vector<16x128xf32>
    %35 = tpu.matmul %33, %34, %cst_28 {dimension_numbers = #tpu.dot_dimension_numbers<[1], [0], [0], [1], [0, 0, 1, 1], [], []>} : vector<16x128xbf16>, vector<128x128xbf16>, vector<16x128xf32> -> vector<16x128xf32>
    %c0_29 = arith.constant 0 : index
    %c0_30 = arith.constant 0 : index
    %36 = vector.load %arg12[%c0_29, %c0_30] : memref<1x128xf32, #tpu.memory_space<vmem>>, vector<1x128xf32>
    %37 = vector.broadcast %36 : vector<1x128xf32> to vector<16x128xf32>
    %38 = arith.addf %35, %37 : vector<16x128xf32>
    %cst_31 = arith.constant 0.000000e+00 : f32
    %39 = vector.broadcast %cst_31 : f32 to vector<16x128xf32>
    %40 = arith.maximumf %38, %39 : vector<16x128xf32>
    %41 = arith.truncf %40 : vector<16x128xf32> to vector<16x128xbf16>
    %c0_32 = arith.constant 0 : index
    %c0_33 = arith.constant 0 : index
    %42 = vector.load %arg13[%c0_32, %c0_33] : memref<128x768xbf16, #tpu.memory_space<vmem>>, vector<128x768xbf16>
    %cst_34 = arith.constant dense<0.000000e+00> : vector<16x768xf32>
    %43 = tpu.matmul %41, %42, %cst_34 {dimension_numbers = #tpu.dot_dimension_numbers<[1], [0], [0], [1], [0, 0, 1, 1], [], []>} : vector<16x128xbf16>, vector<128x768xbf16>, vector<16x768xf32> -> vector<16x768xf32>
    %c0_35 = arith.constant 0 : index
    %c0_36 = arith.constant 0 : index
    %44 = vector.load %arg14[%c0_35, %c0_36] : memref<1x768xf32, #tpu.memory_space<vmem>>, vector<1x768xf32>
    %45 = vector.broadcast %44 : vector<1x768xf32> to vector<16x768xf32>
    %46 = arith.addf %43, %45 : vector<16x768xf32>
    %47 = vector.extract_strided_slice %46 {offsets = [0, 512], sizes = [16, 256], strides = [1, 1]} : vector<16x768xf32> to vector<16x256xf32>
    %c0_37 = arith.constant 0 : index
    %c0_38 = arith.constant 0 : index
    %48 = vector.load %arg17[%c0_37, %c0_38] : memref<16x256xf32, #tpu.memory_space<vmem>>, vector<16x256xf32>
    tpu.vector_store %arg17[%c0_37, %c0_38], %47 {strides = array<i32>} : memref<16x256xf32, #tpu.memory_space<vmem>>, vector<16x256xf32>,
    %49 = vector.extract_strided_slice %46 {offsets = [0, 256], sizes = [16, 256], strides = [1, 1]} : vector<16x768xf32> to vector<16x256xf32>
    %50 = math.exp %49 : vector<16x256xf32>
    %c0_39 = arith.constant 0 : index
    %c0_40 = arith.constant 0 : index
    %51 = vector.load %arg18[%c0_39, %c0_40] : memref<16x256xf32, #tpu.memory_space<vmem>>, vector<16x256xf32>
    tpu.vector_store %arg18[%c0_39, %c0_40], %50 {strides = array<i32>} : memref<16x256xf32, #tpu.memory_space<vmem>>, vector<16x256xf32>,
    %52 = vector.extract_strided_slice %46 {offsets = [0, 0], sizes = [16, 256], strides = [1, 1]} : vector<16x768xf32> to vector<16x256xf32>
    %cst_41 = arith.constant dense<0xFF800000> : vector<16xf32>
    %53 = vector.multi_reduction <maximumf>, %52, %cst_41 [1] : vector<16x256xf32> to vector<16xf32>
    %54 = vector.shape_cast %53 : vector<16xf32> to vector<16x1xf32>
    %55 = vector.broadcast %54 : vector<16x1xf32> to vector<16x256xf32>
    %56 = arith.subf %52, %55 : vector<16x256xf32>
    %57 = math.exp %56 : vector<16x256xf32>
    %cst_42 = arith.constant dense<0.000000e+00> : vector<16xf32>
    %58 = vector.multi_reduction <add>, %57, %cst_42 [1] : vector<16x256xf32> to vector<16xf32>
    %59 = vector.shape_cast %58 : vector<16xf32> to vector<16x1xf32>
    %60 = tpu.reciprocal %59 : vector<16x1xf32> -> vector<16x1xf32>
    %61 = vector.broadcast %60 : vector<16x1xf32> to vector<16x256xf32>
    %62 = arith.mulf %57, %61 : vector<16x256xf32>
    %c0_43 = arith.constant 0 : index
    %c0_44 = arith.constant 0 : index
    %63 = vector.load %arg16[%c0_43, %c0_44] : memref<16x256xf32, #tpu.memory_space<vmem>>, vector<16x256xf32>
    tpu.vector_store %arg16[%c0_43, %c0_44], %62 {strides = array<i32>} : memref<16x256xf32, #tpu.memory_space<vmem>>, vector<16x256xf32>,
    %c0_45 = arith.constant 0 : index
    %c0_46 = arith.constant 0 : index
    %64 = vector.load %arg2[%c0_45, %c0_46] : memref<16x1xf32, #tpu.memory_space<vmem>>, vector<16x1xf32>
    %65 = math.exp %64 : vector<16x1xf32>
    %66 = vector.broadcast %65 : vector<16x1xf32> to vector<16x256xf32>
    %67 = arith.mulf %66, %62 : vector<16x256xf32>
    %c0_47 = arith.constant 0 : index
    %c0_48 = arith.constant 0 : index
    %68 = vector.load %arg19[%c0_47, %c0_48] : memref<16x256xf32, #tpu.memory_space<vmem>>, vector<16x256xf32>
    tpu.vector_store %arg19[%c0_47, %c0_48], %67 {strides = array<i32>} : memref<16x256xf32, #tpu.memory_space<vmem>>, vector<16x256xf32>,
    return
  }
  func.func @transform_0(%arg0: i32) -> (i32, i32) {
    %c0_i32 = arith.constant 0 : i32
    %c0_i32_0 = arith.constant 0 : i32
    return %arg0, %c0_i32 : i32, i32
  }
  func.func @transform_1(%arg0: i32) -> (i32, i32) {
    %c0_i32 = arith.constant 0 : i32
    %c0_i32_0 = arith.constant 0 : i32
    return %arg0, %c0_i32 : i32, i32
  }
  func.func @transform_2(%arg0: i32) -> (i32, i32) {
    %c0_i32 = arith.constant 0 : i32
    %c0_i32_0 = arith.constant 0 : i32
    %c0_i32_1 = arith.constant 0 : i32
    return %c0_i32, %c0_i32_0 : i32, i32
  }
  func.func @transform_3(%arg0: i32) -> (i32, i32) {
    %c0_i32 = arith.constant 0 : i32
    %c0_i32_0 = arith.constant 0 : i32
    %c0_i32_1 = arith.constant 0 : i32
    return %c0_i32, %c0_i32_0 : i32, i32
  }
  func.func @transform_4(%arg0: i32) -> (i32, i32) {
    %c0_i32 = arith.constant 0 : i32
    %c0_i32_0 = arith.constant 0 : i32
    %c0_i32_1 = arith.constant 0 : i32
    return %c0_i32, %c0_i32_0 : i32, i32
  }
  func.func @transform_5(%arg0: i32) -> (i32, i32) {
    %c0_i32 = arith.constant 0 : i32
    %c0_i32_0 = arith.constant 0 : i32
    %c0_i32_1 = arith.constant 0 : i32
    return %c0_i32, %c0_i32_0 : i32, i32
  }
  func.func @transform_6(%arg0: i32) -> (i32, i32) {
    %c0_i32 = arith.constant 0 : i32
    %c0_i32_0 = arith.constant 0 : i32
    %c0_i32_1 = arith.constant 0 : i32
    return %c0_i32, %c0_i32_0 : i32, i32
  }
  func.func @transform_7(%arg0: i32) -> (i32, i32) {
    %c0_i32 = arith.constant 0 : i32
    %c0_i32_0 = arith.constant 0 : i32
    %c0_i32_1 = arith.constant 0 : i32
    return %c0_i32, %c0_i32_0 : i32, i32
  }
  func.func @transform_8(%arg0: i32) -> (i32, i32) {
    %c0_i32 = arith.constant 0 : i32
    %c0_i32_0 = arith.constant 0 : i32
    %c0_i32_1 = arith.constant 0 : i32
    return %c0_i32, %c0_i32_0 : i32, i32
  }
  func.func @transform_9(%arg0: i32) -> (i32, i32) {
    %c0_i32 = arith.constant 0 : i32
    %c0_i32_0 = arith.constant 0 : i32
    %c0_i32_1 = arith.constant 0 : i32
    return %c0_i32, %c0_i32_0 : i32, i32
  }
  func.func @transform_10(%arg0: i32) -> (i32, i32) {
    %c0_i32 = arith.constant 0 : i32
    %c0_i32_0 = arith.constant 0 : i32
    %c0_i32_1 = arith.constant 0 : i32
    return %c0_i32, %c0_i32_0 : i32, i32
  }
  func.func @transform_11(%arg0: i32) -> (i32, i32) {
    %c0_i32 = arith.constant 0 : i32
    %c0_i32_0 = arith.constant 0 : i32
    %c0_i32_1 = arith.constant 0 : i32
    return %c0_i32, %c0_i32_0 : i32, i32
  }
  func.func @transform_12(%arg0: i32) -> (i32, i32) {
    %c0_i32 = arith.constant 0 : i32
    %c0_i32_0 = arith.constant 0 : i32
    %c0_i32_1 = arith.constant 0 : i32
    return %c0_i32, %c0_i32_0 : i32, i32
  }
  func.func @transform_13(%arg0: i32) -> (i32, i32) {
    %c0_i32 = arith.constant 0 : i32
    %c0_i32_0 = arith.constant 0 : i32
    %c0_i32_1 = arith.constant 0 : i32
    return %c0_i32, %c0_i32_0 : i32, i32
  }
  func.func @transform_14(%arg0: i32) -> (i32, i32) {
    %c0_i32 = arith.constant 0 : i32
    %c0_i32_0 = arith.constant 0 : i32
    return %arg0, %c0_i32 : i32, i32
  }
  func.func @transform_15(%arg0: i32) -> (i32, i32) {
    %c0_i32 = arith.constant 0 : i32
    %c0_i32_0 = arith.constant 0 : i32
    return %arg0, %c0_i32 : i32, i32
  }
  func.func @transform_16(%arg0: i32) -> (i32, i32) {
    %c0_i32 = arith.constant 0 : i32
    %c0_i32_0 = arith.constant 0 : i32
    return %arg0, %c0_i32 : i32, i32
  }
  func.func @transform_17(%arg0: i32) -> (i32, i32) {
    %c0_i32 = arith.constant 0 : i32
    %c0_i32_0 = arith.constant 0 : i32
    return %arg0, %c0_i32 : i32, i32
  }
  func.func @transform_18(%arg0: i32) -> (i32, i32) {
    %c0_i32 = arith.constant 0 : i32
    %c0_i32_0 = arith.constant 0 : i32
    return %arg0, %c0_i32 : i32, i32
  }
}

module attributes {stable_mosaic.version = 11 : i64} {
  func.func @dae_zinb_kernel(%arg0: i32, %arg1: memref<16x256xbf16, #tpu.memory_space<vmem>>, %arg2: memref<16x1xf32, #tpu.memory_space<vmem>>, %arg3: memref<256x128xbf16, #tpu.memory_space<vmem>>, %arg4: memref<1x128xf32, #tpu.memory_space<vmem>>, %arg5: memref<128x128xbf16, #tpu.memory_space<vmem>>, %arg6: memref<1x128xf32, #tpu.memory_space<vmem>>, %arg7: memref<128x128xbf16, #tpu.memory_space<vmem>>, %arg8: memref<1x128xf32, #tpu.memory_space<vmem>>, %arg9: memref<128x128xbf16, #tpu.memory_space<vmem>>, %arg10: memref<1x128xf32, #tpu.memory_space<vmem>>, %arg11: memref<128x128xbf16, #tpu.memory_space<vmem>>, %arg12: memref<1x128xf32, #tpu.memory_space<vmem>>, %arg13: memref<128x768xbf16, #tpu.memory_space<vmem>>, %arg14: memref<1x768xf32, #tpu.memory_space<vmem>>, %arg15: memref<16x128xf32, #tpu.memory_space<vmem>>, %arg16: memref<16x256xf32, #tpu.memory_space<vmem>>, %arg17: memref<16x256xf32, #tpu.memory_space<vmem>>, %arg18: memref<16x256xf32, #tpu.memory_space<vmem>>, %arg19: memref<16x256xf32, #tpu.memory_space<vmem>>) attributes {dimension_semantics = [#tpu.dimension_semantics<parallel>], iteration_bounds = array<i64: 1>, scalar_prefetch = 0 : i64, scratch_operands = 0 : i64, tpu.core_type = #tpu.core_type<tc>, window_params = [{transform_indices = @transform_0, window_bounds = array<i64: 16, 256>}, {transform_indices = @transform_1, window_bounds = array<i64: 16, 1>}, {pipeline_mode = #tpu.pipeline_mode<synchronous>, transform_indices = @transform_2, window_bounds = array<i64: 256, 128>}, {pipeline_mode = #tpu.pipeline_mode<synchronous>, transform_indices = @transform_3, window_bounds = array<i64: 1, 128>}, {pipeline_mode = #tpu.pipeline_mode<synchronous>, transform_indices = @transform_4, window_bounds = array<i64: 128, 128>}, {pipeline_mode = #tpu.pipeline_mode<synchronous>, transform_indices = @transform_5, window_bounds = array<i64: 1, 128>}, {pipeline_mode = #tpu.pipeline_mode<synchronous>, transform_indices = @transform_6, window_bounds = array<i64: 128, 128>}, {pipeline_mode = #tpu.pipeline_mode<synchronous>, transform_indices = @transform_7, window_bounds = array<i64: 1, 128>}, {pipeline_mode = #tpu.pipeline_mode<synchronous>, transform_indices = @transform_8, window_bounds = array<i64: 128, 128>}, {pipeline_mode = #tpu.pipeline_mode<synchronous>, transform_indices = @transform_9, window_bounds = array<i64: 1, 128>}, {pipeline_mode = #tpu.pipeline_mode<synchronous>, transform_indices = @transform_10, window_bounds = array<i64: 128, 128>}, {pipeline_mode = #tpu.pipeline_mode<synchronous>, transform_indices = @transform_11, window_bounds = array<i64: 1, 128>}, {pipeline_mode = #tpu.pipeline_mode<synchronous>, transform_indices = @transform_12, window_bounds = array<i64: 128, 768>}, {pipeline_mode = #tpu.pipeline_mode<synchronous>, transform_indices = @transform_13, window_bounds = array<i64: 1, 768>}, {transform_indices = @transform_14, window_bounds = array<i64: 16, 128>}, {transform_indices = @transform_15, window_bounds = array<i64: 16, 256>}, {transform_indices = @transform_16, window_bounds = array<i64: 16, 256>}, {transform_indices = @transform_17, window_bounds = array<i64: 16, 256>}, {transform_indices = @transform_18, window_bounds = array<i64: 16, 256>}]} {
    %c0 = arith.constant 0 : index
    %c0_0 = arith.constant 0 : index
    %0 = vector.load %arg1[%c0, %c0_0] : memref<16x256xbf16, #tpu.memory_space<vmem>>, vector<16x256xbf16>
    %c0_1 = arith.constant 0 : index
    %c0_2 = arith.constant 0 : index
    %1 = vector.load %arg3[%c0_1, %c0_2] : memref<256x128xbf16, #tpu.memory_space<vmem>>, vector<256x128xbf16>
    %cst = arith.constant dense<0.000000e+00> : vector<16x128xf32>
    %2 = tpu.matmul %0, %1, %cst {dimension_numbers = #tpu.dot_dimension_numbers<[1], [0], [0], [1], [0, 0, 1, 1], [], []>} : vector<16x256xbf16>, vector<256x128xbf16>, vector<16x128xf32> -> vector<16x128xf32>
    %c0_3 = arith.constant 0 : index
    %c0_4 = arith.constant 0 : index
    %3 = vector.load %arg4[%c0_3, %c0_4] : memref<1x128xf32, #tpu.memory_space<vmem>>, vector<1x128xf32>
    %4 = vector.broadcast %3 : vector<1x128xf32> to vector<16x128xf32>
    %5 = arith.addf %2, %4 : vector<16x128xf32>
    %cst_5 = arith.constant 0.000000e+00 : f32
    %6 = vector.broadcast %cst_5 : f32 to vector<16x128xf32>
    %7 = arith.maximumf %5, %6 : vector<16x128xf32>
    %8 = arith.truncf %7 : vector<16x128xf32> to vector<16x128xbf16>
    %c0_6 = arith.constant 0 : index
    %c0_7 = arith.constant 0 : index
    %9 = vector.load %arg5[%c0_6, %c0_7] : memref<128x128xbf16, #tpu.memory_space<vmem>>, vector<128x128xbf16>
    %cst_8 = arith.constant dense<0.000000e+00> : vector<16x128xf32>
    %10 = tpu.matmul %8, %9, %cst_8 {dimension_numbers = #tpu.dot_dimension_numbers<[1], [0], [0], [1], [0, 0, 1, 1], [], []>} : vector<16x128xbf16>, vector<128x128xbf16>, vector<16x128xf32> -> vector<16x128xf32>
    %c0_9 = arith.constant 0 : index
    %c0_10 = arith.constant 0 : index
    %11 = vector.load %arg6[%c0_9, %c0_10] : memref<1x128xf32, #tpu.memory_space<vmem>>, vector<1x128xf32>
    %12 = vector.broadcast %11 : vector<1x128xf32> to vector<16x128xf32>
    %13 = arith.addf %10, %12 : vector<16x128xf32>
    %cst_11 = arith.constant 0.000000e+00 : f32
    %14 = vector.broadcast %cst_11 : f32 to vector<16x128xf32>
    %15 = arith.maximumf %13, %14 : vector<16x128xf32>
    %16 = arith.truncf %15 : vector<16x128xf32> to vector<16x128xbf16>
    %c0_12 = arith.constant 0 : index
    %c0_13 = arith.constant 0 : index
    %17 = vector.load %arg7[%c0_12, %c0_13] : memref<128x128xbf16, #tpu.memory_space<vmem>>, vector<128x128xbf16>
    %cst_14 = arith.constant dense<0.000000e+00> : vector<16x128xf32>
    %18 = tpu.matmul %16, %17, %cst_14 {dimension_numbers = #tpu.dot_dimension_numbers<[1], [0], [0], [1], [0, 0, 1, 1], [], []>} : vector<16x128xbf16>, vector<128x128xbf16>, vector<16x128xf32> -> vector<16x128xf32>
    %c0_15 = arith.constant 0 : index
    %c0_16 = arith.constant 0 : index
    %19 = vector.load %arg8[%c0_15, %c0_16] : memref<1x128xf32, #tpu.memory_space<vmem>>, vector<1x128xf32>
    %20 = vector.broadcast %19 : vector<1x128xf32> to vector<16x128xf32>
    %21 = arith.addf %18, %20 : vector<16x128xf32>
    %cst_17 = arith.constant 0.000000e+00 : f32
    %22 = vector.broadcast %cst_17 : f32 to vector<16x128xf32>
    %23 = arith.maximumf %21, %22 : vector<16x128xf32>
    %c0_18 = arith.constant 0 : index
    %c0_19 = arith.constant 0 : index
    %24 = vector.load %arg15[%c0_18, %c0_19] : memref<16x128xf32, #tpu.memory_space<vmem>>, vector<16x128xf32>
    tpu.vector_store %arg15[%c0_18, %c0_19], %23 {strides = array<i32>} : memref<16x128xf32, #tpu.memory_space<vmem>>, vector<16x128xf32>,
    %25 = arith.truncf %23 : vector<16x128xf32> to vector<16x128xbf16>
    %c0_20 = arith.constant 0 : index
    %c0_21 = arith.constant 0 : index
    %26 = vector.load %arg9[%c0_20, %c0_21] : memref<128x128xbf16, #tpu.memory_space<vmem>>, vector<128x128xbf16>
    %cst_22 = arith.constant dense<0.000000e+00> : vector<16x128xf32>
    %27 = tpu.matmul %25, %26, %cst_22 {dimension_numbers = #tpu.dot_dimension_numbers<[1], [0], [0], [1], [0, 0, 1, 1], [], []>} : vector<16x128xbf16>, vector<128x128xbf16>, vector<16x128xf32> -> vector<16x128xf32>
    %c0_23 = arith.constant 0 : index
    %c0_24 = arith.constant 0 : index
    %28 = vector.load %arg10[%c0_23, %c0_24] : memref<1x128xf32, #tpu.memory_space<vmem>>, vector<1x128xf32>
    %29 = vector.broadcast %28 : vector<1x128xf32> to vector<16x128xf32>
    %30 = arith.addf %27, %29 : vector<16x128xf32>
    %cst_25 = arith.constant 0.000000e+00 : f32
    %31 = vector.broadcast %cst_25 : f32 to vector<16x128xf32>
    %32 = arith.maximumf %30, %31 : vector<16x128xf32>
    %33 = arith.truncf %32 : vector<16x128xf32> to vector<16x128xbf16>
    %c0_26 = arith.constant 0 : index
    %c0_27 = arith.constant 0 : index
    %34 = vector.load %arg11[%c0_26, %c0_27] : memref<128x128xbf16, #tpu.memory_space<vmem>>, vector<128x128xbf16>
    %cst_28 = arith.constant dense<0.000000e+00> : vector<16x128xf32>
    %35 = tpu.matmul %33, %34, %cst_28 {dimension_numbers = #tpu.dot_dimension_numbers<[1], [0], [0], [1], [0, 0, 1, 1], [], []>} : vector<16x128xbf16>, vector<128x128xbf16>, vector<16x128xf32> -> vector<16x128xf32>
    %c0_29 = arith.constant 0 : index
    %c0_30 = arith.constant 0 : index
    %36 = vector.load %arg12[%c0_29, %c0_30] : memref<1x128xf32, #tpu.memory_space<vmem>>, vector<1x128xf32>
    %37 = vector.broadcast %36 : vector<1x128xf32> to vector<16x128xf32>
    %38 = arith.addf %35, %37 : vector<16x128xf32>
    %cst_31 = arith.constant 0.000000e+00 : f32
    %39 = vector.broadcast %cst_31 : f32 to vector<16x128xf32>
    %40 = arith.maximumf %38, %39 : vector<16x128xf32>
    %41 = arith.truncf %40 : vector<16x128xf32> to vector<16x128xbf16>
    %c0_32 = arith.constant 0 : index
    %c0_33 = arith.constant 0 : index
    %42 = vector.load %arg13[%c0_32, %c0_33] : memref<128x768xbf16, #tpu.memory_space<vmem>>, vector<128x768xbf16>
    %cst_34 = arith.constant dense<0.000000e+00> : vector<16x768xf32>
    %43 = tpu.matmul %41, %42, %cst_34 {dimension_numbers = #tpu.dot_dimension_numbers<[1], [0], [0], [1], [0, 0, 1, 1], [], []>} : vector<16x128xbf16>, vector<128x768xbf16>, vector<16x768xf32> -> vector<16x768xf32>
    %c0_35 = arith.constant 0 : index
    %c0_36 = arith.constant 0 : index
    %44 = vector.load %arg14[%c0_35, %c0_36] : memref<1x768xf32, #tpu.memory_space<vmem>>, vector<1x768xf32>
    %45 = vector.broadcast %44 : vector<1x768xf32> to vector<16x768xf32>
    %46 = arith.addf %43, %45 : vector<16x768xf32>
    %47 = vector.extract_strided_slice %46 {offsets = [0, 512], sizes = [16, 256], strides = [1, 1]} : vector<16x768xf32> to vector<16x256xf32>
    %c0_37 = arith.constant 0 : index
    %c0_38 = arith.constant 0 : index
    %48 = vector.load %arg17[%c0_37, %c0_38] : memref<16x256xf32, #tpu.memory_space<vmem>>, vector<16x256xf32>
    tpu.vector_store %arg17[%c0_37, %c0_38], %47 {strides = array<i32>} : memref<16x256xf32, #tpu.memory_space<vmem>>, vector<16x256xf32>,
    %49 = vector.extract_strided_slice %46 {offsets = [0, 256], sizes = [16, 256], strides = [1, 1]} : vector<16x768xf32> to vector<16x256xf32>
    %50 = math.exp %49 : vector<16x256xf32>
    %c0_39 = arith.constant 0 : index
    %c0_40 = arith.constant 0 : index
    %51 = vector.load %arg18[%c0_39, %c0_40] : memref<16x256xf32, #tpu.memory_space<vmem>>, vector<16x256xf32>
    tpu.vector_store %arg18[%c0_39, %c0_40], %50 {strides = array<i32>} : memref<16x256xf32, #tpu.memory_space<vmem>>, vector<16x256xf32>,
    %52 = vector.extract_strided_slice %46 {offsets = [0, 0], sizes = [16, 256], strides = [1, 1]} : vector<16x768xf32> to vector<16x256xf32>
    %cst_41 = arith.constant dense<0xFF800000> : vector<16xf32>
    %53 = vector.multi_reduction <maximumf>, %52, %cst_41 [1] : vector<16x256xf32> to vector<16xf32>
    %54 = vector.shape_cast %53 : vector<16xf32> to vector<16x1xf32>
    %55 = vector.broadcast %54 : vector<16x1xf32> to vector<16x256xf32>
    %56 = arith.subf %52, %55 : vector<16x256xf32>
    %57 = math.exp %56 : vector<16x256xf32>
    %cst_42 = arith.constant dense<0.000000e+00> : vector<16xf32>
    %58 = vector.multi_reduction <add>, %57, %cst_42 [1] : vector<16x256xf32> to vector<16xf32>
    %59 = vector.shape_cast %58 : vector<16xf32> to vector<16x1xf32>
    %60 = tpu.reciprocal %59 : vector<16x1xf32> -> vector<16x1xf32>
    %61 = vector.broadcast %60 : vector<16x1xf32> to vector<16x256xf32>
    %62 = arith.mulf %57, %61 : vector<16x256xf32>
    %c0_43 = arith.constant 0 : index
    %c0_44 = arith.constant 0 : index
    %63 = vector.load %arg16[%c0_43, %c0_44] : memref<16x256xf32, #tpu.memory_space<vmem>>, vector<16x256xf32>
    tpu.vector_store %arg16[%c0_43, %c0_44], %62 {strides = array<i32>} : memref<16x256xf32, #tpu.memory_space<vmem>>, vector<16x256xf32>,
    %c0_45 = arith.constant 0 : index
    %c0_46 = arith.constant 0 : index
    %64 = vector.load %arg2[%c0_45, %c0_46] : memref<16x1xf32, #tpu.memory_space<vmem>>, vector<16x1xf32>
    %65 = math.exp %64 : vector<16x1xf32>
    %66 = vector.broadcast %65 : vector<16x1xf32> to vector<16x256xf32>
    %67 = arith.mulf %66, %62 : vector<16x256xf32>
    %c0_47 = arith.constant 0 : index
    %c0_48 = arith.constant 0 : index
    %68 = vector.load %arg19[%c0_47, %c0_48] : memref<16x256xf32, #tpu.memory_space<vmem>>, vector<16x256xf32>
    tpu.vector_store %arg19[%c0_47, %c0_48], %67 {strides = array<i32>} : memref<16x256xf32, #tpu.memory_space<vmem>>, vector<16x256xf32>,
    return
  }
  func.func @transform_0(%arg0: i32) -> (i32, i32) {
    %c0_i32 = arith.constant 0 : i32
    %c0_i32_0 = arith.constant 0 : i32
    return %arg0, %c0_i32 : i32, i32
  }
  func.func @transform_1(%arg0: i32) -> (i32, i32) {
    %c0_i32 = arith.constant 0 : i32
    %c0_i32_0 = arith.constant 0 : i32
    return %arg0, %c0_i32 : i32, i32
  }
  func.func @transform_2(%arg0: i32) -> (i32, i32) {
    %c0_i32 = arith.constant 0 : i32
    %c0_i32_0 = arith.constant 0 : i32
    %c0_i32_1 = arith.constant 0 : i32
    return %c0_i32, %c0_i32_0 : i32, i32
  }
  func.func @transform_3(%arg0: i32) -> (i32, i32) {
    %c0_i32 = arith.constant 0 : i32
    %c0_i32_0 = arith.constant 0 : i32
    %c0_i32_1 = arith.constant 0 : i32
    return %c0_i32, %c0_i32_0 : i32, i32
  }
  func.func @transform_4(%arg0: i32) -> (i32, i32) {
    %c0_i32 = arith.constant 0 : i32
    %c0_i32_0 = arith.constant 0 : i32
    %c0_i32_1 = arith.constant 0 : i32
    return %c0_i32, %c0_i32_0 : i32, i32
  }
  func.func @transform_5(%arg0: i32) -> (i32, i32) {
    %c0_i32 = arith.constant 0 : i32
    %c0_i32_0 = arith.constant 0 : i32
    %c0_i32_1 = arith.constant 0 : i32
    return %c0_i32, %c0_i32_0 : i32, i32
  }
  func.func @transform_6(%arg0: i32) -> (i32, i32) {
    %c0_i32 = arith.constant 0 : i32
    %c0_i32_0 = arith.constant 0 : i32
    %c0_i32_1 = arith.constant 0 : i32
    return %c0_i32, %c0_i32_0 : i32, i32
  }
  func.func @transform_7(%arg0: i32) -> (i32, i32) {
    %c0_i32 = arith.constant 0 : i32
    %c0_i32_0 = arith.constant 0 : i32
    %c0_i32_1 = arith.constant 0 : i32
    return %c0_i32, %c0_i32_0 : i32, i32
  }
  func.func @transform_8(%arg0: i32) -> (i32, i32) {
    %c0_i32 = arith.constant 0 : i32
    %c0_i32_0 = arith.constant 0 : i32
    %c0_i32_1 = arith.constant 0 : i32
    return %c0_i32, %c0_i32_0 : i32, i32
  }
  func.func @transform_9(%arg0: i32) -> (i32, i32) {
    %c0_i32 = arith.constant 0 : i32
    %c0_i32_0 = arith.constant 0 : i32
    %c0_i32_1 = arith.constant 0 : i32
    return %c0_i32, %c0_i32_0 : i32, i32
  }
  func.func @transform_10(%arg0: i32) -> (i32, i32) {
    %c0_i32 = arith.constant 0 : i32
    %c0_i32_0 = arith.constant 0 : i32
    %c0_i32_1 = arith.constant 0 : i32
    return %c0_i32, %c0_i32_0 : i32, i32
  }
  func.func @transform_11(%arg0: i32) -> (i32, i32) {
    %c0_i32 = arith.constant 0 : i32
    %c0_i32_0 = arith.constant 0 : i32
    %c0_i32_1 = arith.constant 0 : i32
    return %c0_i32, %c0_i32_0 : i32, i32
  }
  func.func @transform_12(%arg0: i32) -> (i32, i32) {
    %c0_i32 = arith.constant 0 : i32
    %c0_i32_0 = arith.constant 0 : i32
    %c0_i32_1 = arith.constant 0 : i32
    return %c0_i32, %c0_i32_0 : i32, i32
  }
  func.func @transform_13(%arg0: i32) -> (i32, i32) {
    %c0_i32 = arith.constant 0 : i32
    %c0_i32_0 = arith.constant 0 : i32
    %c0_i32_1 = arith.constant 0 : i32
    return %c0_i32, %c0_i32_0 : i32, i32
  }
  func.func @transform_14(%arg0: i32) -> (i32, i32) {
    %c0_i32 = arith.constant 0 : i32
    %c0_i32_0 = arith.constant 0 : i32
    return %arg0, %c0_i32 : i32, i32
  }
  func.func @transform_15(%arg0: i32) -> (i32, i32) {
    %c0_i32 = arith.constant 0 : i32
    %c0_i32_0 = arith.constant 0 : i32
    return %arg0, %c0_i32 : i32, i32
  }
  func.func @transform_16(%arg0: i32) -> (i32, i32) {
    %c0_i32 = arith.constant 0 : i32
    %c0_i32_0 = arith.constant 0 : i32
    return %arg0, %c0_i32 : i32, i32
  }
  func.func @transform_17(%arg0: i32) -> (i32, i32) {
    %c0_i32 = arith.constant 0 : i32
    %c0_i32_0 = arith.constant 0 : i32
    return %arg0, %c0_i32 : i32, i32
  }
  func.func @transform_18(%arg0: i32) -> (i32, i32) {
    %c0_i32 = arith.constant 0 : i32
    %c0_i32_0 = arith.constant 0 : i32
    return %arg0, %c0_i32 : i32, i32
  }
}

</mosaic_0001>

<bundles_post_ra>
// kernel: _dae_zinb_call.1
= control target key start
LH: loop header
LB: loop body
LE: loop exit
PB: predicated region body
PF: predicated region fallthrough
CT: control target
= control target key end

     0   :  { %s2453_s0 = inlined_call_operand.vmem [shape: bf16[16,256], index: 0, kind: input, shape index: {}]   ;;  %s2454_s1 = inlined_call_operand.vmem [shape: f32[16,1], index: 1, kind: input, shape index: {}]   ;;  %s2455_s2 = inlined_call_operand.hbm [shape: bf16[256,128], index: 2, kind: input, shape index: {}]   ;;  %s2456_s3 = inlined_call_operand.vmem [shape: f32[1,128], index: 3, kind: input, shape index: {}]   ;;  %s2457_s4 = inlined_call_operand.hbm [shape: bf16[128,128], index: 4, kind: input, shape index: {}]   ;;  %s2458_s5 = inlined_call_operand.vmem [shape: f32[1,128], index: 5, kind: input, shape index: {}]   ;;  %s2459_s6 = inlined_call_operand.hbm [shape: bf16[128,128], index: 6, kind: input, shape index: {}]   ;;  %s2460_s7 = inlined_call_operand.vmem [shape: f32[1,128], index: 7, kind: input, shape index: {}]   ;;  %s2461_s8 = inlined_call_operand.hbm [shape: bf16[128,128], index: 8, kind: input, shape index: {}]   ;;  %s2462_s9 = inlined_call_operand.vmem [shape: f32[1,128], index: 9, kind: input, shape index: {}]   ;;  %s2463_s10 = inlined_call_operand.hbm [shape: bf16[128,128], index: 10, kind: input, shape index: {}]   ;;  %s2464_s11 = inlined_call_operand.vmem [shape: f32[1,128], index: 11, kind: input, shape index: {}]   ;;  %s2465_s12 = inlined_call_operand.hbm [shape: bf16[128,768], index: 12, kind: input, shape index: {}]   ;;  %s2466_s13 = inlined_call_operand.vmem [shape: f32[1,768], index: 13, kind: input, shape index: {}]   ;;  %s2467_s14 = inlined_call_operand.hbm [shape: f32[16,128], index: 14, kind: output, shape index: {0}]   ;;  %s2468_s15 = inlined_call_operand.hbm [shape: f32[16,256], index: 15, kind: output, shape index: {1}]   ;;  %s2469_s16 = inlined_call_operand.hbm [shape: f32[16,256], index: 16, kind: output, shape index: {2}]   ;;  %s2470_s17 = inlined_call_operand.hbm [shape: f32[16,256], index: 17, kind: output, shape index: {3}]   ;;  %s2471_s18 = inlined_call_operand.hbm [shape: f32[16,256], index: 18, kind: output, shape index: {4}]  }
   0x1   :  { %2476 = sst [smem:[#allocation27_spill]] %s2453_s0 }
   0x2   :  { %2477 = sst [smem:[#allocation28_spill]] %s2454_s1 }
   0x3   :  { %2478 = sst [smem:[#allocation29_spill]] %s2455_s2 }
   0x4   :  { %2479 = sst [smem:[#allocation30_spill]] %s2471_s18 }
   0x5   :  { %24 = vsyncpa [#allocation3], 0 }
   0x6   :  { %25 = vsyncpa [#allocation6], 0 }
   0x7   :  { %26 = vsyncpa [#allocation9], 0 }
   0x8   :  { %27 = vsyncpa [#allocation12], 0 }
   0x9   :  { %28 = vsyncpa [#allocation4], 0 }
   0xa   :  { %29 = vsyncpa [#allocation15], 0 }
   0xb   :  { %30 = vsyncpa [#allocation18], 0  ;;  %s2064_s27 = smov [#allocation5]   ;;  %s2065_s29 = smov [#allocation8]  }
   0xc   :  { %s54_s28 = sshll.u32 %s2064_s27, 4  ;;  %s82_s30 = sshll.u32 %s2065_s29, 4  ;;  %s55_s28 = int_to_ptr.vmem [resolvable:$true] %s54_s28  ;;  %s2181_s30 = int_to_ptr.vmem [resolvable:$true] %s82_s30 }
   0xd   :  { %s1808_s1 = scalar_lea.hbm %s2457_s4, 1024 }
   0xe   :  { %p1809_p0 = scmp.ne.s32.totalorder %s2457_s4, %s1808_s1  ;;  %p1812_p1 = scmp.lt.u32.totalorder %s1808_s1, %s2457_s4 }
  0x10   :  { %p1814_p2 = pnand %p1812_p1, %p1809_p0 }
  0x12   :  { %1817 = shalt.err (!%p1814_p2)
}
  0x13   :  { %s1818_s23 = scalar_lea.vmem %s55_s28, 1024  ;;  %p1823_p4 = scmp.lt.s32.totalorder %s55_s28, %s55_s28 }
  0x14   :  { %p1819_p3 = scmp.ne.s32.totalorder %s55_s28, %s1818_s23  ;;  %p1824_p5 = scmp.lt.s32.totalorder %s1818_s23, %s1818_s23 }
  0x16   :  { %p1825_p6 = por %p1824_p5, %p1823_p4 }
  0x18   :  { %p1826_p7 = pnand %p1825_p6, %p1819_p3 }
  0x1a   :  { %1829 = shalt.err (!%p1826_p7)
}
  0x1b   :  { %s2066_s24 = smov 64   ;;  %s2067_s25 = smov 4  }
  0x1c   :  { %60 = dma.hbm_to_vmem [thread:$0]  %s2457_s4, 1024, %s55_s28, [#allocation6], %s2066_s24, %s2066_s24, %s2067_s25  }
  0x1d   :  { %s1830_s19 = scalar_lea.hbm %s2461_s8, 1024 }
  0x1e   :  { %p1831_p8 = scmp.ne.s32.totalorder %s2461_s8, %s1830_s19  ;;  %p1834_p9 = scmp.lt.u32.totalorder %s1830_s19, %s2461_s8 }
  0x20   :  { %p1836_p10 = pnand %p1834_p9, %p1831_p8 }
  0x22   :  { %1839 = shalt.err (!%p1836_p10)
}
  0x23   :  { %s1840_s2 = scalar_lea.vmem %s2181_s30, 1024  ;;  %p1845_p12 = scmp.lt.s32.totalorder %s2181_s30, %s2181_s30 }
  0x24   :  { %p1841_p11 = scmp.ne.s32.totalorder %s2181_s30, %s1840_s2  ;;  %p1846_p13 = scmp.lt.s32.totalorder %s1840_s2, %s1840_s2 }
  0x26   :  { %p1847_p0 = por %p1846_p13, %p1845_p12 }
  0x28   :  { %p1848_p1 = pnand %p1847_p0, %p1841_p11 }
  0x2a   :  { %1851 = shalt.err (!%p1848_p1)
}
  0x2b   :  { %88 = dma.hbm_to_vmem [thread:$0]  %s2461_s8, 1024, %s2181_s30, [#allocation9], %s2066_s24, %s2066_s24, %s2067_s25  }
  0x2c   :  { %s2068_s23 = smov [#allocation2]   ;;  %s2069_s27 = smov [#allocation7]  }
  0x2d   :  { %s40_s26 = sshll.u32 %s2068_s23, 4  ;;  %s68_s29 = sshll.u32 %s2069_s27, 4  ;;  %s41_s26 = int_to_ptr.vmem [resolvable:$true] %s40_s26  ;;  %s2218_s29 = int_to_ptr.vmem [resolvable:$true] %s68_s29 }
  0x2e   :  { %s2480_s1 = sld [smem:[#allocation29_spill]] }
  0x34   :  { %s1852_s20 = scalar_lea.hbm %s2480_s1, 2048 }
  0x35   :  { %p1853_p2 = scmp.ne.s32.totalorder %s2480_s1, %s1852_s20  ;;  %p1856_p3 = scmp.lt.u32.totalorder %s1852_s20, %s2480_s1 }
  0x37   :  { %p1858_p4 = pnand %p1856_p3, %p1853_p2 }
  0x39   :  { %1861 = shalt.err (!%p1858_p4)
}
  0x3a   :  { %s1862_s8 = scalar_lea.vmem %s41_s26, 2048  ;;  %p1867_p6 = scmp.lt.s32.totalorder %s41_s26, %s41_s26 }
  0x3b   :  { %p1863_p5 = scmp.ne.s32.totalorder %s41_s26, %s1862_s8  ;;  %p1868_p7 = scmp.lt.s32.totalorder %s1862_s8, %s1862_s8 }
  0x3d   :  { %p1869_p8 = por %p1868_p7, %p1867_p6 }
  0x3f   :  { %p1870_p9 = pnand %p1869_p8, %p1863_p5 }
  0x41   :  { %1873 = shalt.err (!%p1870_p9)
}
  0x42   :  { %46 = dma.hbm_to_vmem [thread:$0]  %s2480_s1, 2048, %s41_s26, [#allocation3], %s2066_s24, %s2066_s24, %s2067_s25  }
  0x43   :  { %s1874_s18 = scalar_lea.hbm %s2459_s6, 1024 }
  0x44   :  { %p1875_p10 = scmp.ne.s32.totalorder %s2459_s6, %s1874_s18  ;;  %p1878_p11 = scmp.lt.u32.totalorder %s1874_s18, %s2459_s6 }
  0x46   :  { %p1880_p12 = pnand %p1878_p11, %p1875_p10 }
  0x48   :  { %1883 = shalt.err (!%p1880_p12)
}
  0x49   :  { %s1884_s21 = scalar_lea.vmem %s2218_s29, 1024  ;;  %p1889_p0 = scmp.lt.s32.totalorder %s2218_s29, %s2218_s29 }
  0x4a   :  { %p1885_p13 = scmp.ne.s32.totalorder %s2218_s29, %s1884_s21  ;;  %p1890_p1 = scmp.lt.s32.totalorder %s1884_s21, %s1884_s21 }
  0x4c   :  { %p1891_p2 = por %p1890_p1, %p1889_p0 }
  0x4e   :  { %p1892_p3 = pnand %p1891_p2, %p1885_p13 }
  0x50   :  { %1895 = shalt.err (!%p1892_p3)
}
  0x51   :  { %74 = dma.hbm_to_vmem [thread:$0]  %s2459_s6, 1024, %s2218_s29, [#allocation6], %s2066_s24, %s2066_s24, %s2067_s25  }
  0x52   :  { %s2070_s22 = smov [#allocation10]   ;;  %s2071_s8 = smov [#allocation11]  }
  0x53   :  { %s96_s2 = sshll.u32 %s2070_s22, 4  ;;  %s110_s30 = sshll.u32 %s2071_s8, 4  ;;  %s97_s2 = int_to_ptr.vmem [resolvable:$true] %s96_s2  ;;  %s2255_s30 = int_to_ptr.vmem [resolvable:$true] %s110_s30 }
  0x54   :  { %s1896_s23 = scalar_lea.hbm %s2463_s10, 1024 }
  0x55   :  { %p1897_p4 = scmp.ne.s32.totalorder %s2463_s10, %s1896_s23  ;;  %p1900_p5 = scmp.lt.u32.totalorder %s1896_s23, %s2463_s10 }
  0x57   :  { %p1902_p6 = pnand %p1900_p5, %p1897_p4 }
  0x59   :  { %1905 = shalt.err (!%p1902_p6)
}
  0x5a   :  { %s1906_s6 = scalar_lea.vmem %s97_s2, 1024  ;;  %p1911_p8 = scmp.lt.s32.totalorder %s97_s2, %s97_s2 }
  0x5b   :  { %p1907_p7 = scmp.ne.s32.totalorder %s97_s2, %s1906_s6  ;;  %p1912_p9 = scmp.lt.s32.totalorder %s1906_s6, %s1906_s6 }
  0x5d   :  { %p1913_p10 = por %p1912_p9, %p1911_p8 }
  0x5f   :  { %p1914_p11 = pnand %p1913_p10, %p1907_p7 }
  0x61   :  { %1917 = shalt.err (!%p1914_p11)
}
  0x62   :  { %102 = dma.hbm_to_vmem [thread:$0]  %s2463_s10, 1024, %s97_s2, [#allocation9], %s2066_s24, %s2066_s24, %s2067_s25  }
  0x63   :  { %s1918_s1 = scalar_lea.hbm %s2465_s12, 6144 }
  0x64   :  { %p1919_p12 = scmp.ne.s32.totalorder %s2465_s12, %s1918_s1  ;;  %p1922_p13 = scmp.lt.u32.totalorder %s1918_s1, %s2465_s12 }
  0x66   :  { %p1924_p0 = pnand %p1922_p13, %p1919_p12 }
  0x68   :  { %1927 = shalt.err (!%p1924_p0)
}
  0x69   :  { %s1928_s23 = scalar_lea.vmem %s2255_s30, 6144  ;;  %p1933_p2 = scmp.lt.s32.totalorder %s2255_s30, %s2255_s30 }
  0x6a   :  { %p1929_p1 = scmp.ne.s32.totalorder %s2255_s30, %s1928_s23  ;;  %p1934_p3 = scmp.lt.s32.totalorder %s1928_s23, %s1928_s23 }
  0x6c   :  { %p1935_p4 = por %p1934_p3, %p1933_p2 }
  0x6e   :  { %p1936_p5 = pnand %p1935_p4, %p1929_p1 }
  0x70   :  { %1939 = shalt.err (!%p1936_p5)
}
  0x71   :  { %s2072_s10 = smov 384   ;;  %s2073_s24 = smov 24  }
  0x72   :  { %116 = dma.hbm_to_vmem [thread:$0]  %s2465_s12, 6144, %s2255_s30, [#allocation12], %s2072_s10, %s2072_s10, %s2073_s24  }
  0x73   :  { %2050 = dma.done.wait [#allocation3], 2048  }
  0x74   :  { %2051 = vsyncadd [#allocation3], 4294965248 }
  0x75   :  { %2052 = dma.done.wait [#allocation6], 2048  }
  0x76   :  { %2053 = vsyncadd [#allocation6], 4294965248 }
  0x77   :  { %2054 = dma.done.wait [#allocation9], 2048  }
  0x78   :  { %2055 = vsyncadd [#allocation9], 4294965248 }
  0x79   :  { %2056 = dma.done.wait [#allocation12], 6144  }
  0x7a   :  { %2057 = vsyncadd [#allocation12], 4294961152  ;;  %v2074_v0 = vmov 0.0   ;;  %v1661_v1 = vld [vmem:[#allocation2 + $0x40] sm:$0xff]   ;;  %v1663_v3 = vld [vmem:[#allocation2 + $0x48] sm:$0xff]   ;;  %s2481_s18 = sld [smem:[#allocation27_spill]] }
  0x7b   :  { %1557 = vmatprep.subr.bf16.mxu1 %v2074_v0  ;;  %v1662_v2 = vld [vmem:[#allocation2] sm:$0xff]   ;;  %1499 = vmatprep.subr.bf16.mxu0 %v1661_v1  ;;  %v1664_v4 = vld [vmem:[#allocation2 + $0x8] sm:$0xff]   ;;  %v1665_v5 = vld [vmem:[#allocation2 + $0x50] sm:$0xff]   ;;  %vm2075_vm0 = vmmov 0   ;;  %s2482_s8 = sld [smem:[#allocation28_spill]]  ;;  %s2077_s23 = smov [#allocation17]  }
  0x7c   :  { %1500 = vmatpush3.bf16.msra.mxu0 %v1662_v2  ;;  %v1666_v6 = vld [vmem:[#allocation2 + $0x10] sm:$0xff]   ;;  %v1667_v7 = vld [vmem:[#allocation2 + $0x58] sm:$0xff]   ;;  %v1669_v9 = vld [vmem:[#allocation2 + $0x60] sm:$0xff]   ;;  %1573 = vmatprep.mubr.msk.bf16.mxu1 %vm2075_vm0, %v2074_v0  ;;  %s1355_s10 = sshll.u32 %s2077_s23, 4  ;;  %s1356_s10 = int_to_ptr.vmem [resolvable:$true] %s1355_s10 }
  0x7d   :  { %1501 = vmatprep.subr.bf16.mxu0 %v1663_v3  ;;  %v1668_v8 = vld [vmem:[#allocation2 + $0x18] sm:$0xff]   ;;  %v1670_v10 = vld [vmem:[#allocation2 + $0x20] sm:$0xff]   ;;  %v1671_v11 = vld [vmem:[#allocation2 + $0x68] sm:$0xff]   ;;  %s1940_s24 = scalar_lea.vmem %s1356_s10, 512  ;;  %p1945_p7 = scmp.lt.s32.totalorder %s1356_s10, %s1356_s10 }
  0x7e   :  { %v1672_v12 = vld [vmem:[#allocation2 + $0x28] sm:$0xff]   ;;  %v1680_v14 = vld [vmem:[#allocation5] sm:$0xff]   ;;  %v1673_v15 = vld [vmem:[#allocation2 + $0x70] sm:$0xff]   ;;  %p1941_p6 = scmp.ne.s32.totalorder %s1356_s10, %s1940_s24  ;;  %p1946_p8 = scmp.lt.s32.totalorder %s1940_s24, %s1940_s24 }
  0x7f   :  { %1558 = vmatpush3.bf16.msra.mxu1 %v1680_v14  ;;  %v1681_v16 = vld [vmem:[#allocation5 + $0x8] sm:$0xff]   ;;  %v1674_v17 = vld [vmem:[#allocation2 + $0x30] sm:$0xff]   ;;  %v1675_v18 = vld [vmem:[#allocation2 + $0x78] sm:$0xff]  }
  0x80   :  { %1502 = vmatpush3.bf16.msra.mxu0 %v1664_v4  ;;  %v1679_v13 = vld [vmem:[%s2481_s18 + $0x4] ss:$8 sps:$4 sm:$0xff]   ;;  %1559 = vmatprep.subr.bf16.mxu1 %v2074_v0  ;;  %v1682_v19 = vld [vmem:[#allocation5 + $0x10] sm:$0xff]   ;;  %v1676_v20 = vld [vmem:[#allocation2 + $0x38] sm:$0xff]   ;;  %p1947_p9 = por %p1946_p8, %p1945_p7 }
  0x81   :  { %1503 = vmatprep.subr.bf16.mxu0 %v1665_v5  ;;  %317 = vmatprep.mubr.bf16.mxu0 %v1679_v13  ;;  %v1683_v21 = vld [vmem:[#allocation5 + $0x18] sm:$0xff]   ;;  %v1677_v22 = vld [vmem:[%s2481_s18] ss:$8 sps:$4 sm:$0xff]   ;;  %v1686_v25 = vld [vmem:[#allocation5 + $0x30] sm:$0xff]  }
  0x82   :  { %v1684_v23 = vld [vmem:[#allocation5 + $0x20] sm:$0xff]   ;;  %v1685_v24 = vld [vmem:[#allocation5 + $0x28] sm:$0xff]   ;;  %v1687_v26 = vld [vmem:[#allocation5 + $0x38] sm:$0xff]   ;;  %p1948_p10 = pnand %p1947_p9, %p1941_p6 }
  0x83   :  { %1560 = vmatpush3.bf16.msra.mxu1 %v1681_v16  ;;  %v1688_v27 = vld [vmem:[#allocation7] sm:$0xff]   ;;  %v1689_v28 = vld [vmem:[#allocation7 + $0x8] sm:$0xff]   ;;  %v1690_v29 = vld [vmem:[#allocation7 + $0x10] sm:$0xff]  }
  0x84   :  { %1504 = vmatpush3.bf16.msra.mxu0 %v1666_v6  ;;  %1561 = vmatprep.subr.bf16.mxu1 %v2074_v0  ;;  %v1691_v30 = vld [vmem:[#allocation7 + $0x18] sm:$0xff]   ;;  %v1692_v31 = vld [vmem:[#allocation7 + $0x20] sm:$0xff]   ;;  %v1693_v32 = vld [vmem:[#allocation7 + $0x28] sm:$0xff]  }
  0x85   :  { %1505 = vmatprep.subr.bf16.mxu0 %v1667_v7  ;;  %v1396_v34 = vld [vmem:[%s2456_s3] ss:$0 sm:$0xff]  ;;  %v1694_v45 = vld [vmem:[#allocation7 + $0x30] sm:$0xff]   ;;  %v1695_v46 = vld [vmem:[#allocation7 + $0x38] sm:$0xff]  }
  0x86   :  { %v1696_v47 = vld [vmem:[#allocation8] sm:$0xff]   ;;  %v1697_v48 = vld [vmem:[#allocation8 + $0x8] sm:$0xff]   ;;  %v1698_v49 = vld [vmem:[#allocation8 + $0x10] sm:$0xff]  }
  0x87   :  { %1562 = vmatpush3.bf16.msra.mxu1 %v1682_v19  ;;  %v1699_v50 = vld [vmem:[#allocation8 + $0x18] sm:$0xff]   ;;  %v1700_v51 = vld [vmem:[#allocation8 + $0x20] sm:$0xff]   ;;  %v1701_v52 = vld [vmem:[#allocation8 + $0x28] sm:$0xff]  }
  0x88   :  { %1506 = vmatpush3.bf16.msra.mxu0 %v1668_v8  ;;  %1563 = vmatprep.subr.bf16.mxu1 %v2074_v0  ;;  %v1415_v53 = vld [vmem:[%s2458_s5] ss:$0 sm:$0xff]  ;;  %v1702_v63 = vld [vmem:[#allocation8 + $0x30] sm:$0xff]   ;;  %v1703_v1 = vld [vmem:[#allocation8 + $0x38] sm:$0xff]  }
  0x89   :  { %1507 = vmatprep.subr.bf16.mxu0 %v1669_v9  ;;  %v1704_v2 = vld [vmem:[#allocation10] sm:$0xff]   ;;  %v1705_v3 = vld [vmem:[#allocation10 + $0x8] sm:$0xff]   ;;  %v1706_v4 = vld [vmem:[#allocation10 + $0x10] sm:$0xff]  }
  0x8a   :  { %v1707_v5 = vld [vmem:[#allocation10 + $0x18] sm:$0xff]   ;;  %v1708_v6 = vld [vmem:[#allocation10 + $0x20] sm:$0xff]   ;;  %v1709_v7 = vld [vmem:[#allocation10 + $0x28] sm:$0xff]  }
  0x8b   :  { %1564 = vmatpush3.bf16.msra.mxu1 %v1683_v21  ;;  %v1424_v8 = vld [vmem:[%s2460_s7] ss:$0 sm:$0xff]  ;;  %v1711_v19 = vld [vmem:[#allocation10 + $0x38] sm:$0xff]  }
  0x8c   :  { %1508 = vmatpush3.bf16.msra.mxu0 %v1670_v10  ;;  %1565 = vmatprep.subr.bf16.mxu1 %v2074_v0  ;;  %v1714_v21 = vld [vmem:[#allocation11 + $0x4] ss:$24 sps:$4 sm:$0xff]  }
  0x8d   :  { %1509 = vmatprep.subr.bf16.mxu0 %v1671_v11 }
  0x8f   :  { %1566 = vmatpush3.bf16.msra.mxu1 %v1684_v23  ;;  %v1720_v23 = vld [vmem:[#allocation11 + $0x34] ss:$24 sps:$4 sm:$0xff]  }
  0x90   :  { %1510 = vmatpush3.bf16.msra.mxu0 %v1672_v12  ;;  %1567 = vmatprep.subr.bf16.mxu1 %v2074_v0 }
  0x91   :  { %1511 = vmatprep.subr.bf16.mxu0 %v1673_v15 }
  0x93   :  { %1568 = vmatpush3.bf16.msra.mxu1 %v1685_v24  ;;  %v1718_v24 = vld [vmem:[#allocation11 + $0x30] ss:$24 sps:$4 sm:$0xff]  }
  0x94   :  { %1512 = vmatpush3.bf16.msra.mxu0 %v1674_v17  ;;  %1569 = vmatprep.subr.bf16.mxu1 %v2074_v0 }
  0x95   :  { %1513 = vmatprep.subr.bf16.mxu0 %v1675_v18  ;;  %v1710_v18 = vld [vmem:[#allocation10 + $0x30] sm:$0xff]  }
  0x97   :  { %1570 = vmatpush3.bf16.msra.mxu1 %v1686_v25  ;;  %v1726_v25 = vld [vmem:[#allocation11 + $0x64] ss:$24 sps:$4 sm:$0xff]  }
  0x98   :  { %1514 = vmatpush3.bf16.msra.mxu0 %v1676_v20  ;;  %1571 = vmatprep.subr.bf16.mxu1 %v2074_v0  ;;  %v1712_v20 = vld [vmem:[#allocation11] ss:$24 sps:$4 sm:$0xff]  }
  0x99   :  { %1577 = vmatprep.subr.bf16.mxu0 %v2074_v0 }
  0x9b   :  { %318 = vmatmul.mubr.bf16.vlgmr.msra.gmra.mrb[0].mxu0 %v1677_v22  ;;  %1572 = vmatpush3.bf16.msra.mxu1 %v1687_v26  ;;  %v1717_v22 = vld [vmem:[#allocation11 + $0xc] ss:$24 sps:$4 sm:$0xff]   ;;  %v1724_v26 = vld [vmem:[#allocation11 + $0x60] ss:$24 sps:$4 sm:$0xff]  }
  0x9c   :  { %1593 = vmatprep.mubr.msk.bf16.mxu0 %vm2075_vm0, %v2074_v0  ;;  %1597 = vmatprep.subr.bf16.mxu1 %v2074_v0 }
  0x9d   :  { %1578 = vmatpush3.bf16.msra.mxu0 %v1688_v27  ;;  %v1732_v27 = vld [vmem:[#allocation11 + $0x94] ss:$24 sps:$4 sm:$0xff]  }
  0x9e   :  { %1579 = vmatprep.subr.bf16.mxu0 %v2074_v0 }
  0xa1   :  { %1580 = vmatpush3.bf16.msra.mxu0 %v1689_v28  ;;  %v1730_v28 = vld [vmem:[#allocation11 + $0x90] ss:$24 sps:$4 sm:$0xff]  }
  0xa2   :  { %1581 = vmatprep.subr.bf16.mxu0 %v2074_v0 }
  0xa5   :  { %1582 = vmatpush3.bf16.msra.mxu0 %v1690_v29  ;;  %v1736_v29 = vld [vmem:[#allocation11 + $0xc0] ss:$24 sps:$4 sm:$0xff]  }
  0xa6   :  { %1583 = vmatprep.subr.bf16.mxu0 %v2074_v0 }
  0xa9   :  { %1584 = vmatpush3.bf16.msra.mxu0 %v1691_v30  ;;  %v1744_v30 = vld [vmem:[#allocation11 + $0xf4] ss:$24 sps:$4 sm:$0xff]  }
  0xaa   :  { %1585 = vmatprep.subr.bf16.mxu0 %v2074_v0 }
  0xad   :  { %1586 = vmatpush3.bf16.msra.mxu0 %v1692_v31  ;;  %v1742_v31 = vld [vmem:[#allocation11 + $0xf0] ss:$24 sps:$4 sm:$0xff]  }
  0xae   :  { %1587 = vmatprep.subr.bf16.mxu0 %v2074_v0 }
  0xb1   :  { %1588 = vmatpush3.bf16.msra.mxu0 %v1693_v32  ;;  %v1433_v32 = vld [vmem:[%s2462_s9] ss:$0 sm:$0xff] }
  0xb2   :  { %1589 = vmatprep.subr.bf16.mxu0 %v2074_v0 }
  0xb5   :  { %1590 = vmatpush3.bf16.msra.mxu0 %v1694_v45  ;;  %v1729_v45 = vld [vmem:[#allocation11 + $0x6c] ss:$24 sps:$4 sm:$0xff]  }
  0xb6   :  { %1591 = vmatprep.subr.bf16.mxu0 %v2074_v0 }
  0xb9   :  { %1592 = vmatpush3.bf16.msra.mxu0 %v1695_v46  ;;  %v1727_v46 = vld [vmem:[#allocation11 + $0x68] ss:$24 sps:$4 sm:$0xff]  }
  0xba   :  { %1617 = vmatprep.subr.bf16.mxu0 %v2074_v0 }
 0x16e   :  { %v1515_v33 = vpop.f32.mrb[0].mxu0 }
 0x16f   :  { %v1516_v35 = vpop.f32.mrb[1].mxu0 }
 0x170   :  { %v1517_v36 = vadd.f32 %v1516_v35, %v1515_v33  ;;  %v1518_v37 = vpop.f32.mrb[2].mxu0 }
 0x171   :  { %v1519_v38 = vpop.f32.mrb[3].mxu0 }
 0x172   :  { %v320_v39 = vadd.f32 %v1517_v36, %v1396_v34  ;;  %v1520_v40 = vadd.f32 %v1519_v38, %v1518_v37 }
 0x174   :  { %v323_v41 = vadd.f32 %v1520_v40, %v1396_v34  ;;  %v326_v42 = vmax.f32 %v320_v39, 0.0 }
 0x176   :  { %v327_v43 = vmax.f32 %v323_v41, 0.0  ;;  %v1715_v41 = vld [vmem:[#allocation11 + $0x8] ss:$24 sps:$4 sm:$0xff]  }
 0x178   :  { %v328_v44 = vpack.c.bf16 %v327_v43, %v326_v42  ;;  %v1723_v43 = vld [vmem:[#allocation11 + $0x3c] ss:$24 sps:$4 sm:$0xff]  }
 0x17a   :  { %1574 = vmatmul.mubr.bf16.vlgmr.msra.gmra.mrb[0].mxu1 %v328_v44  ;;  %v1721_v44 = vld [vmem:[#allocation11 + $0x38] ss:$24 sps:$4 sm:$0xff]  }
 0x17b   :  { %1613 = vmatprep.mubr.msk.bf16.mxu1 %vm2075_vm0, %v2074_v0  ;;  %1598 = vmatpush3.bf16.msra.mxu1 %v1696_v47  ;;  %v1735_v47 = vld [vmem:[#allocation11 + $0x9c] ss:$24 sps:$4 sm:$0xff]  }
 0x17c   :  { %1599 = vmatprep.subr.bf16.mxu1 %v2074_v0 }
 0x17f   :  { %1600 = vmatpush3.bf16.msra.mxu1 %v1697_v48  ;;  %v1733_v48 = vld [vmem:[#allocation11 + $0x98] ss:$24 sps:$4 sm:$0xff]  }
 0x180   :  { %1601 = vmatprep.subr.bf16.mxu1 %v2074_v0 }
 0x183   :  { %1602 = vmatpush3.bf16.msra.mxu1 %v1698_v49  ;;  %v1741_v49 = vld [vmem:[#allocation11 + $0xcc] ss:$24 sps:$4 sm:$0xff]  }
 0x184   :  { %1603 = vmatprep.subr.bf16.mxu1 %v2074_v0 }
 0x187   :  { %1604 = vmatpush3.bf16.msra.mxu1 %v1699_v50  ;;  %v1739_v50 = vld [vmem:[#allocation11 + $0xc8] ss:$24 sps:$4 sm:$0xff]  }
 0x188   :  { %1605 = vmatprep.subr.bf16.mxu1 %v2074_v0 }
 0x18b   :  { %1606 = vmatpush3.bf16.msra.mxu1 %v1700_v51  ;;  %v1747_v51 = vld [vmem:[#allocation11 + $0xfc] ss:$24 sps:$4 sm:$0xff]  }
 0x18c   :  { %1607 = vmatprep.subr.bf16.mxu1 %v2074_v0 }
 0x18f   :  { %1608 = vmatpush3.bf16.msra.mxu1 %v1701_v52  ;;  %v1745_v52 = vld [vmem:[#allocation11 + $0xf8] ss:$24 sps:$4 sm:$0xff]  }
 0x190   :  { %1609 = vmatprep.subr.bf16.mxu1 %v2074_v0 }
 0x193   :  { %1610 = vmatpush3.bf16.msra.mxu1 %v1702_v63  ;;  %v1442_v63 = vld [vmem:[%s2464_s11] ss:$0 sm:$0xff] }
 0x194   :  { %1611 = vmatprep.subr.bf16.mxu1 %v2074_v0 }
 0x197   :  { %1612 = vmatpush3.bf16.msra.mxu1 %v1703_v1 }
 0x198   :  { %1111 = vmatprep.subr.bf16.mxu1 %v1714_v21  ;;  %v1780_v21 = vld [vmem:[#allocation11 + $0x134] ss:$24 sps:$4 sm:$0xff]  }
 0x24d   :  { %v434_v54 = vpop.f32.mrb[0].mxu1 }
 0x24e   :  { %v435_v55 = vadd.f32 %v1415_v53, %v434_v54  ;;  %v1575_v56 = vpop.f32.mrb[1].mxu1  ;;  %v1748_v54 = vld [vmem:[#allocation11 + $0x120] ss:$24 sps:$4 sm:$0xff]  }
 0x24f   :  { %v437_v57 = vpop.f32.mrb[2].mxu1  ;;  %v1751_v56 = vld [vmem:[#allocation11 + $0x128] ss:$24 sps:$4 sm:$0xff]  }
 0x250   :  { %v438_v58 = vadd.f32 %v1415_v53, %v437_v57  ;;  %v1576_v59 = vpop.f32.mrb[3].mxu1  ;;  %v441_v60 = vmax.f32 %v435_v55, 0.0  ;;  %v1750_v53 = vld [vmem:[#allocation11 + $0x124] ss:$24 sps:$4 sm:$0xff]   ;;  %v1756_v57 = vld [vmem:[#allocation11 + $0x154] ss:$24 sps:$4 sm:$0xff]  }
 0x251   :  { %v1753_v55 = vld [vmem:[#allocation11 + $0x12c] ss:$24 sps:$4 sm:$0xff]   ;;  %v1759_v59 = vld [vmem:[#allocation11 + $0x15c] ss:$24 sps:$4 sm:$0xff]  }
 0x252   :  { %v442_v61 = vmax.f32 %v438_v58, 0.0  ;;  %v1754_v58 = vld [vmem:[#allocation11 + $0x150] ss:$24 sps:$4 sm:$0xff]  }
 0x254   :  { %v443_v62 = vpack.c.bf16 %v442_v61, %v441_v60  ;;  %v1757_v60 = vld [vmem:[#allocation11 + $0x158] ss:$24 sps:$4 sm:$0xff]   ;;  %v1762_v61 = vld [vmem:[#allocation11 + $0x14] ss:$24 sps:$4 sm:$0xff]  }
 0x256   :  { %1594 = vmatmul.mubr.bf16.vlgmr.msra.gmra.mrb[4].mxu0 %v443_v62  ;;  %v2076_v62 = vmov 0  }
 0x257   :  { %1633 = vmatprep.mubr.msk.bf16.mxu0 %vm2075_vm0, %v2074_v0  ;;  %1618 = vmatpush3.bf16.msra.mxu0 %v1704_v2 }
 0x258   :  { %1619 = vmatprep.subr.bf16.mxu0 %v2074_v0  ;;  %1659 = vset.pattern.permute.xlu0 %v2076_v62 }
 0x259   :  { %1660 = vset.pattern.permute.xlu1 %v2076_v62 }
 0x25b   :  { %1620 = vmatpush3.bf16.msra.mxu0 %v1705_v3 }
 0x25c   :  { %1621 = vmatprep.subr.bf16.mxu0 %v2074_v0 }
 0x25f   :  { %1622 = vmatpush3.bf16.msra.mxu0 %v1706_v4 }
 0x260   :  { %1623 = vmatprep.subr.bf16.mxu0 %v2074_v0 }
 0x263   :  { %1624 = vmatpush3.bf16.msra.mxu0 %v1707_v5 }
 0x264   :  { %1625 = vmatprep.subr.bf16.mxu0 %v2074_v0 }
 0x267   :  { %1626 = vmatpush3.bf16.msra.mxu0 %v1708_v6 }
 0x268   :  { %1627 = vmatprep.subr.bf16.mxu0 %v2074_v0 }
 0x26b   :  { %1628 = vmatpush3.bf16.msra.mxu0 %v1709_v7 }
 0x26c   :  { %1629 = vmatprep.subr.bf16.mxu0 %v2074_v0 }
 0x26f   :  { %1630 = vmatpush3.bf16.msra.mxu0 %v1710_v18  ;;  %v1772_v18 = vld [vmem:[#allocation11 + $0xd0] ss:$24 sps:$4 sm:$0xff]  }
 0x270   :  { %1631 = vmatprep.subr.bf16.mxu0 %v2074_v0  ;;  %v1738_v0 = vld [vmem:[#allocation11 + $0xc4] ss:$24 sps:$4 sm:$0xff]  }
 0x273   :  { %1632 = vmatpush3.bf16.msra.mxu0 %v1711_v19  ;;  %v1777_v19 = vld [vmem:[#allocation11 + $0x104] ss:$24 sps:$4 sm:$0xff]  }
 0x274   :  { %1154 = vmatprep.subr.bf16.mxu0 %v1717_v22  ;;  %v1778_v22 = vld [vmem:[#allocation11 + $0x130] ss:$24 sps:$4 sm:$0xff]  }
 0x329   :  { %v549_v9 = vpop.f32.mrb[4].mxu0 }
 0x32a   :  { %v550_v10 = vadd.f32 %v1424_v8, %v549_v9  ;;  %v1595_v11 = vpop.f32.mrb[5].mxu0  ;;  %v1760_v9 = vld [vmem:[#allocation11 + $0x10] ss:$24 sps:$4 sm:$0xff]  }
 0x32b   :  { %v552_v12 = vpop.f32.mrb[6].mxu0  ;;  %v1765_v11 = vld [vmem:[#allocation11 + $0x44] ss:$24 sps:$4 sm:$0xff]  }
 0x32c   :  { %v556_v13 = vmax.f32 %v550_v10, 0.0  ;;  %v553_v14 = vadd.f32 %v1424_v8, %v552_v12  ;;  %v1596_v15 = vpop.f32.mrb[7].mxu0  ;;  %v1763_v12 = vld [vmem:[#allocation11 + $0x40] ss:$24 sps:$4 sm:$0xff]  }
 0x32d   :  { %v1771_v15 = vld [vmem:[#allocation11 + $0xa4] ss:$24 sps:$4 sm:$0xff]  }
 0x32e   :  { %558 = vst [vmem:[#allocation13] sm:$0xff] %v556_v13  ;;  %v557_v16 = vmax.f32 %v553_v14, 0.0  ;;  %v1766_v14 = vld [vmem:[#allocation11 + $0x70] ss:$24 sps:$4 sm:$0xff]  }
 0x330   :  { %559 = vst [vmem:[#allocation13 + $0x8] sm:$0xff] %v557_v16  ;;  %v560_v17 = vpack.c.bf16 %v557_v16, %v556_v13  ;;  %v1768_v13 = vld [vmem:[#allocation11 + $0x74] ss:$24 sps:$4 sm:$0xff]   ;;  %v1769_v16 = vld [vmem:[#allocation11 + $0xa0] ss:$24 sps:$4 sm:$0xff]  }
 0x332   :  { %1614 = vmatmul.mubr.bf16.vlgmr.msra.gmra.mrb[4].mxu1 %v560_v17  ;;  %v1774_v17 = vld [vmem:[#allocation11 + $0xd4] ss:$24 sps:$4 sm:$0xff]  }
 0x333   :  { %1112 = vmatpush1.bf16.msra.mxu1 %v1712_v20  ;;  %1143 = vmatprep.mubr.bf16.mxu1 %v2076_v62  ;;  %v1775_v20 = vld [vmem:[#allocation11 + $0x100] ss:$24 sps:$4 sm:$0xff]  }
 0x334   :  { %1113 = vmatprep.subr.bf16.mxu1 %v1720_v23  ;;  %v1783_v23 = vld [vmem:[#allocation11 + $0x164] ss:$24 sps:$4 sm:$0xff]  }
 0x337   :  { %1114 = vmatpush1.bf16.msra.mxu1 %v1718_v24  ;;  %v1781_v24 = vld [vmem:[#allocation11 + $0x160] ss:$24 sps:$4 sm:$0xff]  }
 0x338   :  { %1115 = vmatprep.subr.bf16.mxu1 %v1726_v25  ;;  %v841_v25 = vlaneseq }
 0x33b   :  { %1116 = vmatpush1.bf16.msra.mxu1 %v1724_v26  ;;  %v842_v26 = vshrl.u32 %v841_v25, 7 }
 0x33c   :  { %1117 = vmatprep.subr.bf16.mxu1 %v1732_v27 }
 0x33d   :  { %v843_v27 = vsub.s32 0, %v842_v26 }
 0x33f   :  { %1118 = vmatpush1.bf16.msra.mxu1 %v1730_v28  ;;  %v851_v28 = vsub.s32 2, %v842_v26 }
 0x340   :  { %1119 = vmatprep.subr.bf16.mxu1 %v1738_v0  ;;  %v839_v0 = vld [vmem:[%s2466_s13] sm:$0x3f] }
 0x343   :  { %1120 = vmatpush1.bf16.msra.mxu1 %v1736_v29  ;;  %v847_v29 = vsub.s32 1, %v842_v26 }
 0x344   :  { %1121 = vmatprep.subr.bf16.mxu1 %v1744_v30  ;;  %v855_v30 = vsub.s32 3, %v842_v26 }
 0x347   :  { %1122 = vmatpush1.bf16.msra.mxu1 %v1742_v31  ;;  %v844_v31 = vrot.slane %v839_v0, %v843_v27 }
 0x348   :  { %1123 = vmatprep.subr.bf16.mxu1 %v1750_v53 }
 0x34b   :  { %1124 = vmatpush1.bf16.msra.mxu1 %v1748_v54 }
 0x34c   :  { %1125 = vmatprep.subr.bf16.mxu1 %v1756_v57 }
 0x34f   :  { %1126 = vmatpush1.bf16.msra.mxu1 %v1754_v58 }
 0x350   :  { %1197 = vmatprep.subr.bf16.mxu1 %v1762_v61  ;;  %v859_v61 = vsub.s32 4, %v842_v26 }
 0x405   :  { %v666_v33 = vpop.f32.mrb[4].mxu1 }
 0x406   :  { %v667_v34 = vadd.f32 %v1433_v32, %v666_v33  ;;  %v1615_v35 = vpop.f32.mrb[5].mxu1  ;;  %v848_v33 = vrot.slane %v839_v0, %v847_v29 }
 0x407   :  { %v669_v36 = vpop.f32.mrb[6].mxu1 }
 0x408   :  { %v670_v37 = vadd.f32 %v1433_v32, %v669_v36  ;;  %v1616_v38 = vpop.f32.mrb[7].mxu1  ;;  %v673_v39 = vmax.f32 %v667_v34, 0.0  ;;  %v852_v32 = vrot.slane %v839_v0, %v851_v28  ;;  %v856_v34 = vrot.slane %v839_v0, %v855_v30  ;;  %v1291_v28 = vld [vmem:[%s2482_s8 + $0x8] sm:$0xff] }
 0x409   :  { %v1294_v29 = vmul.f32 1.442695, %v1291_v28 }
 0x40a   :  { %v674_v40 = vmax.f32 %v670_v37, 0.0 }
 0x40c   :  { %v675_v42 = vpack.c.bf16 %v674_v40, %v673_v39 }
 0x40e   :  { %1634 = vmatmul.mubr.bf16.vlgmr.msra.gmra.mrb[8].mxu0 %v675_v42 }
 0x40f   :  { %1155 = vmatpush1.bf16.msra.mxu0 %v1715_v41  ;;  %1186 = vmatprep.mubr.bf16.mxu0 %v2076_v62 }
 0x410   :  { %1156 = vmatprep.subr.bf16.mxu0 %v1723_v43 }
 0x413   :  { %1157 = vmatpush1.bf16.msra.mxu0 %v1721_v44 }
 0x414   :  { %1158 = vmatprep.subr.bf16.mxu0 %v1729_v45 }
 0x417   :  { %1159 = vmatpush1.bf16.msra.mxu0 %v1727_v46 }
 0x418   :  { %1160 = vmatprep.subr.bf16.mxu0 %v1735_v47 }
 0x41b   :  { %1161 = vmatpush1.bf16.msra.mxu0 %v1733_v48 }
 0x41c   :  { %1162 = vmatprep.subr.bf16.mxu0 %v1741_v49 }
 0x41f   :  { %1163 = vmatpush1.bf16.msra.mxu0 %v1739_v50 }
 0x420   :  { %1164 = vmatprep.subr.bf16.mxu0 %v1747_v51 }
 0x423   :  { %1165 = vmatpush1.bf16.msra.mxu0 %v1745_v52 }
 0x424   :  { %1166 = vmatprep.subr.bf16.mxu0 %v1753_v55 }
 0x427   :  { %1167 = vmatpush1.bf16.msra.mxu0 %v1751_v56 }
 0x428   :  { %1168 = vmatprep.subr.bf16.mxu0 %v1759_v59 }
 0x42b   :  { %1169 = vmatpush1.bf16.msra.mxu0 %v1757_v60 }
 0x4e1   :  { %v781_v1 = vpop.f32.mrb[8].mxu0 }
 0x4e2   :  { %v782_v2 = vadd.f32 %v1442_v63, %v781_v1  ;;  %v1635_v3 = vpop.f32.mrb[9].mxu0 }
 0x4e3   :  { %v784_v4 = vpop.f32.mrb[10].mxu0 }
 0x4e4   :  { %v785_v5 = vadd.f32 %v1442_v63, %v784_v4  ;;  %v1636_v6 = vpop.f32.mrb[11].mxu0  ;;  %v788_v7 = vmax.f32 %v782_v2, 0.0  ;;  %v860_v63 = vrot.slane %v839_v0, %v859_v61 }
 0x4e6   :  { %v789_v8 = vmax.f32 %v785_v5, 0.0 }
 0x4e8   :  { %v790_v10 = vpack.c.bf16 %v789_v8, %v788_v7 }
 0x4ea   :  { %1144 = vmatmul.mubr.bf16.vlgmr.msra.gmra.mrb[8].mxu1 %v790_v10  ;;  %1187 = vmatmul.mubr.bf16.vlgmr.msra.gmra.mrb[12].mxu0 %v790_v10 }
 0x4eb   :  { %1198 = vmatpush1.bf16.msra.mxu1 %v1760_v9  ;;  %1229 = vmatprep.mubr.bf16.mxu1 %v2076_v62  ;;  %v863_v62 = vsub.s32 5, %v842_v26 }
 0x4ec   :  { %1199 = vmatprep.subr.bf16.mxu1 %v1765_v11 }
 0x4ed   :  { %v864_v1 = vrot.slane %v839_v0, %v863_v62 }
 0x4ef   :  { %1200 = vmatpush1.bf16.msra.mxu1 %v1763_v12 }
 0x4f0   :  { %1201 = vmatprep.subr.bf16.mxu1 %v1768_v13 }
 0x4f3   :  { %1202 = vmatpush1.bf16.msra.mxu1 %v1766_v14 }
 0x4f4   :  { %1203 = vmatprep.subr.bf16.mxu1 %v1771_v15 }
 0x4f7   :  { %1204 = vmatpush1.bf16.msra.mxu1 %v1769_v16 }
 0x4f8   :  { %1205 = vmatprep.subr.bf16.mxu1 %v1774_v17 }
 0x4fb   :  { %1206 = vmatpush1.bf16.msra.mxu1 %v1772_v18 }
 0x4fc   :  { %1207 = vmatprep.subr.bf16.mxu1 %v1777_v19 }
 0x4ff   :  { %1208 = vmatpush1.bf16.msra.mxu1 %v1775_v20 }
 0x500   :  { %1209 = vmatprep.subr.bf16.mxu1 %v1780_v21 }
 0x503   :  { %1210 = vmatpush1.bf16.msra.mxu1 %v1778_v22 }
 0x504   :  { %1211 = vmatprep.subr.bf16.mxu1 %v1783_v23 }
 0x507   :  { %1212 = vmatpush1.bf16.msra.mxu1 %v1781_v24 }
 0x50a   :  { %1230 = vmatmul.mubr.bf16.vlgmr.msra.gmra.mrb[12].mxu1 %v790_v10  ;;  %v1290_v10 = vld [vmem:[%s2482_s8] sm:$0xff] }
 0x50b   :  { %v1292_v11 = vmul.f32 1.442695, %v1290_v10 }
 0x5bd   :  { %v1145_v35 = vpop.f32.mrb[8].mxu1  ;;  %v1188_v36 = vpop.f32.mrb[12].mxu0 }
 0x5be   :  { %v1146_v37 = vadd.f32 %v1145_v35, %v844_v31  ;;  %v1189_v38 = vadd.f32 %v1188_v36, %v852_v32  ;;  %v1147_v39 = vpop.f32.mrb[9].mxu1  ;;  %v1190_v40 = vpop.f32.mrb[13].mxu0 }
 0x5bf   :  { %v1148_v41 = vadd.f32 %v1147_v39, %v848_v33  ;;  %v1191_v42 = vadd.f32 %v1190_v40, %v856_v34  ;;  %v1149_v43 = vpop.f32.mrb[10].mxu1  ;;  %v1192_v44 = vpop.f32.mrb[14].mxu0 }
 0x5c0   :  { %v1244_v45 = vmul.f32 1.442695, %v1189_v38  ;;  %v1150_v46 = vadd.f32 %v1149_v43, %v844_v31  ;;  %v1193_v47 = vadd.f32 %v1192_v44, %v852_v32  ;;  %v1151_v48 = vpop.f32.mrb[11].mxu1  ;;  %v1194_v49 = vpop.f32.mrb[15].mxu0 }
 0x5c1   :  { %v1246_v50 = vmul.f32 1.442695, %v1191_v42  ;;  %v1152_v51 = vadd.f32 %v1151_v48, %v848_v33  ;;  %v1195_v52 = vadd.f32 %v1194_v49, %v856_v34  ;;  %v1256_v53 = vmax.f32 %v1146_v37, %v1148_v41 }
 0x5c2   :  { %1784 = vpow2.f32 %v1244_v45  ;;  %v1248_v54 = vmul.f32 1.442695, %v1193_v47 }
 0x5c3   :  { %1786 = vpow2.f32 %v1246_v50  ;;  %v1250_v55 = vmul.f32 1.442695, %v1195_v52  ;;  %1257 = vmax.xlane.f32.xlu0 %v1256_v53  ;;  %v1259_v56 = vmax.f32 %v1150_v46, %v1152_v51 }
 0x5c4   :  { %1788 = vpow2.f32 %v1248_v54 }
 0x5c5   :  { %1790 = vpow2.f32 %v1250_v55 }
 0x5c6   :  { %1792 = vpow2.f32 %v1292_v11 }
 0x5c7   :  { %1260 = vmax.xlane.f32.xlu0 %v1259_v56 }
 0x5cc   :  { %v1785_v57 = vpop.eup %1784 }
 0x5cd   :  { %v1787_v58 = vpop.eup %1786  ;;  %1252 = vst [vmem:[#allocation17] sm:$0xff] %v1785_v57 }
 0x5ce   :  { %v1789_v59 = vpop.eup %1788  ;;  %1253 = vst [vmem:[#allocation17 + $0x8] sm:$0xff] %v1787_v58 }
 0x5cf   :  { %v1791_v60 = vpop.eup %1790  ;;  %1254 = vst [vmem:[#allocation17 + $0x10] sm:$0xff] %v1789_v59 }
 0x5d0   :  { %1255 = vst [vmem:[#allocation17 + $0x18] sm:$0xff] %v1791_v60  ;;  %v1793_v12 = vpop.eup %1792 }
 0x5dd   :  { %v1231_v2 = vpop.f32.mrb[12].mxu1  ;;  %1298 = vperm.xlu0 %1659, %v1793_v12  }
 0x5de   :  { %v1232_v3 = vadd.f32 %v1231_v2, %v860_v63  ;;  %v1233_v4 = vpop.f32.mrb[13].mxu1 }
 0x5df   :  { %v1234_v5 = vadd.f32 %v1233_v4, %v864_v1  ;;  %v1235_v6 = vpop.f32.mrb[14].mxu1 }
 0x5e0   :  { %1240 = vst [vmem:[#allocation16] sm:$0xff] %v1232_v3  ;;  %v1236_v7 = vadd.f32 %v1235_v6, %v860_v63  ;;  %v1237_v8 = vpop.f32.mrb[15].mxu1 }
 0x5e1   :  { %1241 = vst [vmem:[#allocation16 + $0x8] sm:$0xff] %v1234_v5  ;;  %v1238_v9 = vadd.f32 %v1237_v8, %v864_v1 }
 0x5e2   :  { %1242 = vst [vmem:[#allocation16 + $0x10] sm:$0xff] %v1236_v7 }
 0x5e3   :  { %1243 = vst [vmem:[#allocation16 + $0x18] sm:$0xff] %v1238_v9 }
 0x650   :  { %v1258_v13 = vpop.xlane.xlu0 %1257 }
 0x651   :  { %v1262_v14 = vsub.f32 %v1146_v37, %v1258_v13  ;;  %v1263_v15 = vsub.f32 %v1148_v41, %v1258_v13 }
 0x653   :  { %v1266_v16 = vmul.f32 1.442695, %v1262_v14  ;;  %v1268_v17 = vmul.f32 1.442695, %v1263_v15 }
 0x654   :  { %v1261_v18 = vpop.xlane.xlu0 %1260 }
 0x655   :  { %1794 = vpow2.f32 %v1266_v16  ;;  %v1264_v19 = vsub.f32 %v1150_v46, %v1261_v18  ;;  %v1265_v20 = vsub.f32 %v1152_v51, %v1261_v18 }
 0x656   :  { %1796 = vpow2.f32 %v1268_v17 }
 0x657   :  { %v1270_v21 = vmul.f32 1.442695, %v1264_v19  ;;  %v1272_v22 = vmul.f32 1.442695, %v1265_v20 }
 0x659   :  { %1798 = vpow2.f32 %v1270_v21 }
 0x65a   :  { %1800 = vpow2.f32 %v1272_v22 }
 0x65b   :  { %1802 = vpow2.f32 %v1294_v29 }
 0x65f   :  { %v1795_v23 = vpop.eup %1794 }
 0x660   :  { %v1797_v24 = vpop.eup %1796 }
 0x661   :  { %v1274_v25 = vadd.f32 %v1797_v24, %v1795_v23 }
 0x663   :  { %v2356_v26 = vpop.eup %1798  ;;  %1275 = vadd.xlane.f32.xlu1 %v1274_v25 }
 0x664   :  { %v2358_v27 = vpop.eup %1800 }
 0x665   :  { %v1277_v0 = vadd.f32 %v2358_v27, %v2356_v26  ;;  %v1803_v30 = vpop.eup %1802 }
 0x667   :  { %1278 = vadd.xlane.f32.xlu1 %v1277_v0 }
 0x678   :  { %1303 = vperm.xlu1 %1660, %v1803_v30  }
 0x679   :  { %1951 = shalt.err (!%p1948_p10)
}
 0x67a   :  { %s1952_s12 = scalar_lea.hbm %s2470_s17, 512 }
 0x67b   :  { %p1953_p11 = scmp.ne.s32.totalorder %s2470_s17, %s1952_s12  ;;  %p1956_p12 = scmp.lt.u32.totalorder %s1952_s12, %s2470_s17 }
 0x67d   :  { %p1958_p13 = pnand %p1956_p12, %p1953_p11 }
 0x67f   :  { %1961 = shalt.err (!%p1958_p13)
}
 0x680   :  { %s2078_s19 = smov 256   ;;  %s2079_s6 = smov 16  }
 0x681   :  { %1361 = dma.vmem_to_hbm [thread:$0]  %s1356_s10, 512, %s2470_s17, [#allocation18], %s2078_s19, %s2078_s19, %s2079_s6  }
 0x682   :  { %s2080_s5 = smov [#allocation13]  }
 0x683   :  { %s1319_s20 = sshll.u32 %s2080_s5, 4  ;;  %s1320_s20 = int_to_ptr.vmem [resolvable:$true] %s1319_s20 }
 0x684   :  { %s1962_s7 = scalar_lea.vmem %s1320_s20, 256  ;;  %p1967_p1 = scmp.lt.s32.totalorder %s1320_s20, %s1320_s20 }
 0x685   :  { %p1963_p0 = scmp.ne.s32.totalorder %s1320_s20, %s1962_s7  ;;  %p1968_p2 = scmp.lt.s32.totalorder %s1962_s7, %s1962_s7 }
 0x687   :  { %p1969_p3 = por %p1968_p2, %p1967_p1 }
 0x689   :  { %p1970_p4 = pnand %p1969_p3, %p1963_p0 }
 0x68b   :  { %1973 = shalt.err (!%p1970_p4)
}
 0x68c   :  { %s1974_s26 = scalar_lea.hbm %s2467_s14, 256 }
 0x68d   :  { %p1975_p5 = scmp.ne.s32.totalorder %s2467_s14, %s1974_s26  ;;  %p1978_p6 = scmp.lt.u32.totalorder %s1974_s26, %s2467_s14 }
 0x68f   :  { %p1980_p7 = pnand %p1978_p6, %p1975_p5 }
 0x691   :  { %1983 = shalt.err (!%p1980_p7)
}
 0x692   :  { %s2081_s22 = smov 128   ;;  %s2082_s8 = smov 8   ;;  %v1299_v34 = vpop.permute.xlu0 %1298 }
 0x693   :  { %1325 = dma.vmem_to_hbm [thread:$0]  %s1320_s20, 256, %s2467_s14, [#allocation4], %s2081_s22, %s2081_s22, %s2082_s8  }
 0x694   :  { %s2083_s23 = smov [#allocation14]   ;;  %s2084_s24 = smov [#allocation16]  }
 0x695   :  { %s1331_s10 = sshll.u32 %s2083_s23, 4  ;;  %s1343_s25 = sshll.u32 %s2084_s24, 4  ;;  %s1332_s10 = int_to_ptr.vmem [resolvable:$true] %s1331_s10  ;;  %s2394_s25 = int_to_ptr.vmem [resolvable:$true] %s1343_s25 }
 0x696   :  { %s2085_s2 = smov [#allocation19]   ;;  %s1984_s12 = scalar_lea.vmem %s1332_s10, 512 }
 0x697   :  { %s1367_s14 = sshll.u32 %s2085_s2, 4  ;;  %p1985_p8 = scmp.ne.s32.totalorder %s1332_s10, %s1984_s12  ;;  %s2396_s14 = int_to_ptr.vmem [resolvable:$true] %s1367_s14 }
 0x698   :  { %p1989_p9 = scmp.lt.s32.totalorder %s1332_s10, %s1332_s10  ;;  %p1990_p10 = scmp.lt.s32.totalorder %s1984_s12, %s1984_s12 }
 0x69a   :  { %p1991_p11 = por %p1990_p10, %p1989_p9 }
 0x69c   :  { %p1992_p12 = pnand %p1991_p11, %p1985_p8 }
 0x6f0   :  { %v1276_v31 = vpop.xlane.xlu1 %1275 }
 0x6f1   :  { %1804 = vrcp.f32 %v1276_v31 }
 0x6f4   :  { %v1279_v32 = vpop.xlane.xlu1 %1278 }
 0x6f5   :  { %1806 = vrcp.f32 %v1279_v32 }
 0x6f8   :  { %v1304_v40 = vpop.permute.xlu1 %1303 }
 0x6fb   :  { %v1805_v33 = vpop.eup %1804 }
 0x6fc   :  { %v1282_v35 = vmul.f32 %v1805_v33, %v1795_v23  ;;  %v1283_v36 = vmul.f32 %v1805_v33, %v1797_v24 }
 0x6fe   :  { %1286 = vst [vmem:[#allocation14] sm:$0xff] %v1282_v35  ;;  %1287 = vst [vmem:[#allocation14 + $0x8] sm:$0xff] %v1283_v36  ;;  %v1306_v37 = vmul.f32 %v1299_v34, %v1282_v35  ;;  %v1307_v38 = vmul.f32 %v1299_v34, %v1283_v36 }
 0x6ff   :  { %v1807_v39 = vpop.eup %1806 }
 0x700   :  { %1310 = vst [vmem:[#allocation19] sm:$0xff] %v1306_v37  ;;  %1311 = vst [vmem:[#allocation19 + $0x8] sm:$0xff] %v1307_v38  ;;  %v1284_v41 = vmul.f32 %v1807_v39, %v2356_v26  ;;  %v1285_v42 = vmul.f32 %v1807_v39, %v2358_v27 }
 0x702   :  { %1288 = vst [vmem:[#allocation14 + $0x10] sm:$0xff] %v1284_v41  ;;  %1289 = vst [vmem:[#allocation14 + $0x18] sm:$0xff] %v1285_v42  ;;  %v1308_v43 = vmul.f32 %v1304_v40, %v1284_v41  ;;  %v1309_v44 = vmul.f32 %v1304_v40, %v1285_v42 }
 0x703   :  { %1995 = shalt.err (!%p1992_p12)
}
 0x704   :  { %s1996_s27 = scalar_lea.hbm %s2468_s15, 512 }
 0x705   :  { %p1997_p13 = scmp.ne.s32.totalorder %s2468_s15, %s1996_s27  ;;  %p2000_p0 = scmp.lt.u32.totalorder %s1996_s27, %s2468_s15 }
 0x707   :  { %p2002_p1 = pnand %p2000_p0, %p1997_p13 }
 0x709   :  { %2005 = shalt.err (!%p2002_p1)
}
 0x70a   :  { %1337 = dma.vmem_to_hbm [thread:$0]  %s1332_s10, 512, %s2468_s15, [#allocation15], %s2078_s19, %s2078_s19, %s2079_s6   ;;  %1312 = vst [vmem:[#allocation19 + $0x10] sm:$0xff] %v1308_v43  ;;  %1313 = vst [vmem:[#allocation19 + $0x18] sm:$0xff] %v1309_v44 }
 0x70b   :  { %s2006_s21 = scalar_lea.vmem %s2394_s25, 512  ;;  %p2011_p3 = scmp.lt.s32.totalorder %s2394_s25, %s2394_s25 }
 0x70c   :  { %p2007_p2 = scmp.ne.s32.totalorder %s2394_s25, %s2006_s21  ;;  %p2012_p4 = scmp.lt.s32.totalorder %s2006_s21, %s2006_s21 }
 0x70e   :  { %p2013_p5 = por %p2012_p4, %p2011_p3 }
 0x710   :  { %p2014_p6 = pnand %p2013_p5, %p2007_p2 }
 0x712   :  { %2017 = shalt.err (!%p2014_p6)
}
 0x713   :  { %s2018_s11 = scalar_lea.hbm %s2469_s16, 512 }
 0x714   :  { %p2019_p7 = scmp.ne.s32.totalorder %s2469_s16, %s2018_s11  ;;  %p2022_p8 = scmp.lt.u32.totalorder %s2018_s11, %s2469_s16 }
 0x716   :  { %p2024_p9 = pnand %p2022_p8, %p2019_p7 }
 0x718   :  { %2027 = shalt.err (!%p2024_p9)
}
 0x719   :  { %1349 = dma.vmem_to_hbm [thread:$0]  %s2394_s25, 512, %s2469_s16, [#allocation15], %s2078_s19, %s2078_s19, %s2079_s6  }
 0x71a   :  { %s2028_s4 = scalar_lea.vmem %s2396_s14, 512  ;;  %p2033_p11 = scmp.lt.s32.totalorder %s2396_s14, %s2396_s14 }
 0x71b   :  { %p2029_p10 = scmp.ne.s32.totalorder %s2396_s14, %s2028_s4  ;;  %p2034_p12 = scmp.lt.s32.totalorder %s2028_s4, %s2028_s4 }
 0x71d   :  { %p2035_p13 = por %p2034_p12, %p2033_p11 }
 0x71f   :  { %p2036_p0 = pnand %p2035_p13, %p2029_p10 }
 0x721   :  { %2039 = shalt.err (!%p2036_p0)
}
 0x722   :  { %s2483_s10 = sld [smem:[#allocation30_spill]] }
 0x728   :  { %s2040_s24 = scalar_lea.hbm %s2483_s10, 512 }
 0x729   :  { %p2041_p1 = scmp.ne.s32.totalorder %s2483_s10, %s2040_s24  ;;  %p2044_p2 = scmp.lt.u32.totalorder %s2040_s24, %s2483_s10 }
 0x72b   :  { %p2046_p3 = pnand %p2044_p2, %p2041_p1 }
 0x72d   :  { %2049 = shalt.err (!%p2046_p3)
}
 0x72e   :  { %1373 = dma.vmem_to_hbm [thread:$0]  %s2396_s14, 512, %s2483_s10, [#allocation18], %s2078_s19, %s2078_s19, %s2079_s6  }
 0x72f   :  { %2058 = dma.done.wait [#allocation4], 256  }
 0x730   :  { %2059 = vsyncadd [#allocation4], 4294967040 }
 0x731   :  { %2060 = dma.done.wait [#allocation15], 1024  }
 0x732   :  { %2061 = vsyncadd [#allocation15], 4294966272 }
 0x733   :  { %2062 = dma.done.wait [#allocation18], 1024  }
 0x734   :  { %2063 = vsyncadd [#allocation18], 4294966272 }
 0x735   :  { %1389 = vsyncpa [#allocation3], 1 }
 0x736   :  { %1390 = vsyncpa [#allocation6], 1 }
 0x737   :  { %1391 = vsyncpa [#allocation9], 1 }
 0x738   :  { %1392 = vsyncpa [#allocation12], 1 }
 0x739   :  { %1393 = vsyncpa [#allocation4], 1 }
 0x73a   :  { %1394 = vsyncpa [#allocation15], 1 }
 0x73b   :  { %1395 = vsyncpa [#allocation18], 1 }

// kernel: _dae_zinb_call.1
= control target key start
LH: loop header
LB: loop body
LE: loop exit
PB: predicated region body
PF: predicated region fallthrough
CT: control target
= control target key end

     0   :  { %s2453_s0 = inlined_call_operand.vmem [shape: bf16[16,256], index: 0, kind: input, shape index: {}]   ;;  %s2454_s1 = inlined_call_operand.vmem [shape: f32[16,1], index: 1, kind: input, shape index: {}]   ;;  %s2455_s2 = inlined_call_operand.hbm [shape: bf16[256,128], index: 2, kind: input, shape index: {}]   ;;  %s2456_s3 = inlined_call_operand.vmem [shape: f32[1,128], index: 3, kind: input, shape index: {}]   ;;  %s2457_s4 = inlined_call_operand.hbm [shape: bf16[128,128], index: 4, kind: input, shape index: {}]   ;;  %s2458_s5 = inlined_call_operand.vmem [shape: f32[1,128], index: 5, kind: input, shape index: {}]   ;;  %s2459_s6 = inlined_call_operand.hbm [shape: bf16[128,128], index: 6, kind: input, shape index: {}]   ;;  %s2460_s7 = inlined_call_operand.vmem [shape: f32[1,128], index: 7, kind: input, shape index: {}]   ;;  %s2461_s8 = inlined_call_operand.hbm [shape: bf16[128,128], index: 8, kind: input, shape index: {}]   ;;  %s2462_s9 = inlined_call_operand.vmem [shape: f32[1,128], index: 9, kind: input, shape index: {}]   ;;  %s2463_s10 = inlined_call_operand.hbm [shape: bf16[128,128], index: 10, kind: input, shape index: {}]   ;;  %s2464_s11 = inlined_call_operand.vmem [shape: f32[1,128], index: 11, kind: input, shape index: {}]   ;;  %s2465_s12 = inlined_call_operand.hbm [shape: bf16[128,768], index: 12, kind: input, shape index: {}]   ;;  %s2466_s13 = inlined_call_operand.vmem [shape: f32[1,768], index: 13, kind: input, shape index: {}]   ;;  %s2467_s14 = inlined_call_operand.hbm [shape: f32[16,128], index: 14, kind: output, shape index: {0}]   ;;  %s2468_s15 = inlined_call_operand.hbm [shape: f32[16,256], index: 15, kind: output, shape index: {1}]   ;;  %s2469_s16 = inlined_call_operand.hbm [shape: f32[16,256], index: 16, kind: output, shape index: {2}]   ;;  %s2470_s17 = inlined_call_operand.hbm [shape: f32[16,256], index: 17, kind: output, shape index: {3}]   ;;  %s2471_s18 = inlined_call_operand.hbm [shape: f32[16,256], index: 18, kind: output, shape index: {4}]  }
   0x1   :  { %2476 = sst [smem:[#allocation27_spill]] %s2453_s0 }
   0x2   :  { %2477 = sst [smem:[#allocation28_spill]] %s2454_s1 }
   0x3   :  { %2478 = sst [smem:[#allocation29_spill]] %s2455_s2 }
   0x4   :  { %2479 = sst [smem:[#allocation30_spill]] %s2471_s18 }
   0x5   :  { %24 = vsyncpa [#allocation3], 0 }
   0x6   :  { %25 = vsyncpa [#allocation6], 0 }
   0x7   :  { %26 = vsyncpa [#allocation9], 0 }
   0x8   :  { %27 = vsyncpa [#allocation12], 0 }
   0x9   :  { %28 = vsyncpa [#allocation4], 0 }
   0xa   :  { %29 = vsyncpa [#allocation15], 0 }
   0xb   :  { %30 = vsyncpa [#allocation18], 0  ;;  %s2064_s27 = smov [#allocation5]   ;;  %s2065_s29 = smov [#allocation8]  }
   0xc   :  { %s54_s28 = sshll.u32 %s2064_s27, 4  ;;  %s82_s30 = sshll.u32 %s2065_s29, 4  ;;  %s55_s28 = int_to_ptr.vmem [resolvable:$true] %s54_s28  ;;  %s2181_s30 = int_to_ptr.vmem [resolvable:$true] %s82_s30 }
   0xd   :  { %s1808_s1 = scalar_lea.hbm %s2457_s4, 1024 }
   0xe   :  { %p1809_p0 = scmp.ne.s32.totalorder %s2457_s4, %s1808_s1  ;;  %p1812_p1 = scmp.lt.u32.totalorder %s1808_s1, %s2457_s4 }
  0x10   :  { %p1814_p2 = pnand %p1812_p1, %p1809_p0 }
  0x12   :  { %1817 = shalt.err (!%p1814_p2)
}
  0x13   :  { %s1818_s23 = scalar_lea.vmem %s55_s28, 1024  ;;  %p1823_p4 = scmp.lt.s32.totalorder %s55_s28, %s55_s28 }
  0x14   :  { %p1819_p3 = scmp.ne.s32.totalorder %s55_s28, %s1818_s23  ;;  %p1824_p5 = scmp.lt.s32.totalorder %s1818_s23, %s1818_s23 }
  0x16   :  { %p1825_p6 = por %p1824_p5, %p1823_p4 }
  0x18   :  { %p1826_p7 = pnand %p1825_p6, %p1819_p3 }
  0x1a   :  { %1829 = shalt.err (!%p1826_p7)
}
  0x1b   :  { %s2066_s24 = smov 64   ;;  %s2067_s25 = smov 4  }
  0x1c   :  { %60 = dma.hbm_to_vmem [thread:$0]  %s2457_s4, 1024, %s55_s28, [#allocation6], %s2066_s24, %s2066_s24, %s2067_s25  }
  0x1d   :  { %s1830_s19 = scalar_lea.hbm %s2461_s8, 1024 }
  0x1e   :  { %p1831_p8 = scmp.ne.s32.totalorder %s2461_s8, %s1830_s19  ;;  %p1834_p9 = scmp.lt.u32.totalorder %s1830_s19, %s2461_s8 }
  0x20   :  { %p1836_p10 = pnand %p1834_p9, %p1831_p8 }
  0x22   :  { %1839 = shalt.err (!%p1836_p10)
}
  0x23   :  { %s1840_s2 = scalar_lea.vmem %s2181_s30, 1024  ;;  %p1845_p12 = scmp.lt.s32.totalorder %s2181_s30, %s2181_s30 }
  0x24   :  { %p1841_p11 = scmp.ne.s32.totalorder %s2181_s30, %s1840_s2  ;;  %p1846_p13 = scmp.lt.s32.totalorder %s1840_s2, %s1840_s2 }
  0x26   :  { %p1847_p0 = por %p1846_p13, %p1845_p12 }
  0x28   :  { %p1848_p1 = pnand %p1847_p0, %p1841_p11 }
  0x2a   :  { %1851 = shalt.err (!%p1848_p1)
}
  0x2b   :  { %88 = dma.hbm_to_vmem [thread:$0]  %s2461_s8, 1024, %s2181_s30, [#allocation9], %s2066_s24, %s2066_s24, %s2067_s25  }
  0x2c   :  { %s2068_s23 = smov [#allocation2]   ;;  %s2069_s27 = smov [#allocation7]  }
  0x2d   :  { %s40_s26 = sshll.u32 %s2068_s23, 4  ;;  %s68_s29 = sshll.u32 %s2069_s27, 4  ;;  %s41_s26 = int_to_ptr.vmem [resolvable:$true] %s40_s26  ;;  %s2218_s29 = int_to_ptr.vmem [resolvable:$true] %s68_s29 }
  0x2e   :  { %s2480_s1 = sld [smem:[#allocation29_spill]] }
  0x34   :  { %s1852_s20 = scalar_lea.hbm %s2480_s1, 2048 }
  0x35   :  { %p1853_p2 = scmp.ne.s32.totalorder %s2480_s1, %s1852_s20  ;;  %p1856_p3 = scmp.lt.u32.totalorder %s1852_s20, %s2480_s1 }
  0x37   :  { %p1858_p4 = pnand %p1856_p3, %p1853_p2 }
  0x39   :  { %1861 = shalt.err (!%p1858_p4)
}
  0x3a   :  { %s1862_s8 = scalar_lea.vmem %s41_s26, 2048  ;;  %p1867_p6 = scmp.lt.s32.totalorder %s41_s26, %s41_s26 }
  0x3b   :  { %p1863_p5 = scmp.ne.s32.totalorder %s41_s26, %s1862_s8  ;;  %p1868_p7 = scmp.lt.s32.totalorder %s1862_s8, %s1862_s8 }
  0x3d   :  { %p1869_p8 = por %p1868_p7, %p1867_p6 }
  0x3f   :  { %p1870_p9 = pnand %p1869_p8, %p1863_p5 }
  0x41   :  { %1873 = shalt.err (!%p1870_p9)
}
  0x42   :  { %46 = dma.hbm_to_vmem [thread:$0]  %s2480_s1, 2048, %s41_s26, [#allocation3], %s2066_s24, %s2066_s24, %s2067_s25  }
  0x43   :  { %s1874_s18 = scalar_lea.hbm %s2459_s6, 1024 }
  0x44   :  { %p1875_p10 = scmp.ne.s32.totalorder %s2459_s6, %s1874_s18  ;;  %p1878_p11 = scmp.lt.u32.totalorder %s1874_s18, %s2459_s6 }
  0x46   :  { %p1880_p12 = pnand %p1878_p11, %p1875_p10 }
  0x48   :  { %1883 = shalt.err (!%p1880_p12)
}
  0x49   :  { %s1884_s21 = scalar_lea.vmem %s2218_s29, 1024  ;;  %p1889_p0 = scmp.lt.s32.totalorder %s2218_s29, %s2218_s29 }
  0x4a   :  { %p1885_p13 = scmp.ne.s32.totalorder %s2218_s29, %s1884_s21  ;;  %p1890_p1 = scmp.lt.s32.totalorder %s1884_s21, %s1884_s21 }
  0x4c   :  { %p1891_p2 = por %p1890_p1, %p1889_p0 }
  0x4e   :  { %p1892_p3 = pnand %p1891_p2, %p1885_p13 }
  0x50   :  { %1895 = shalt.err (!%p1892_p3)
}
  0x51   :  { %74 = dma.hbm_to_vmem [thread:$0]  %s2459_s6, 1024, %s2218_s29, [#allocation6], %s2066_s24, %s2066_s24, %s2067_s25  }
  0x52   :  { %s2070_s22 = smov [#allocation10]   ;;  %s2071_s8 = smov [#allocation11]  }
  0x53   :  { %s96_s2 = sshll.u32 %s2070_s22, 4  ;;  %s110_s30 = sshll.u32 %s2071_s8, 4  ;;  %s97_s2 = int_to_ptr.vmem [resolvable:$true] %s96_s2  ;;  %s2255_s30 = int_to_ptr.vmem [resolvable:$true] %s110_s30 }
  0x54   :  { %s1896_s23 = scalar_lea.hbm %s2463_s10, 1024 }
  0x55   :  { %p1897_p4 = scmp.ne.s32.totalorder %s2463_s10, %s1896_s23  ;;  %p1900_p5 = scmp.lt.u32.totalorder %s1896_s23, %s2463_s10 }
  0x57   :  { %p1902_p6 = pnand %p1900_p5, %p1897_p4 }
  0x59   :  { %1905 = shalt.err (!%p1902_p6)
}
  0x5a   :  { %s1906_s6 = scalar_lea.vmem %s97_s2, 1024  ;;  %p1911_p8 = scmp.lt.s32.totalorder %s97_s2, %s97_s2 }
  0x5b   :  { %p1907_p7 = scmp.ne.s32.totalorder %s97_s2, %s1906_s6  ;;  %p1912_p9 = scmp.lt.s32.totalorder %s1906_s6, %s1906_s6 }
  0x5d   :  { %p1913_p10 = por %p1912_p9, %p1911_p8 }
  0x5f   :  { %p1914_p11 = pnand %p1913_p10, %p1907_p7 }
  0x61   :  { %1917 = shalt.err (!%p1914_p11)
}
  0x62   :  { %102 = dma.hbm_to_vmem [thread:$0]  %s2463_s10, 1024, %s97_s2, [#allocation9], %s2066_s24, %s2066_s24, %s2067_s25  }
  0x63   :  { %s1918_s1 = scalar_lea.hbm %s2465_s12, 6144 }
  0x64   :  { %p1919_p12 = scmp.ne.s32.totalorder %s2465_s12, %s1918_s1  ;;  %p1922_p13 = scmp.lt.u32.totalorder %s1918_s1, %s2465_s12 }
  0x66   :  { %p1924_p0 = pnand %p1922_p13, %p1919_p12 }
  0x68   :  { %1927 = shalt.err (!%p1924_p0)
}
  0x69   :  { %s1928_s23 = scalar_lea.vmem %s2255_s30, 6144  ;;  %p1933_p2 = scmp.lt.s32.totalorder %s2255_s30, %s2255_s30 }
  0x6a   :  { %p1929_p1 = scmp.ne.s32.totalorder %s2255_s30, %s1928_s23  ;;  %p1934_p3 = scmp.lt.s32.totalorder %s1928_s23, %s1928_s23 }
  0x6c   :  { %p1935_p4 = por %p1934_p3, %p1933_p2 }
  0x6e   :  { %p1936_p5 = pnand %p1935_p4, %p1929_p1 }
  0x70   :  { %1939 = shalt.err (!%p1936_p5)
}
  0x71   :  { %s2072_s10 = smov 384   ;;  %s2073_s24 = smov 24  }
  0x72   :  { %116 = dma.hbm_to_vmem [thread:$0]  %s2465_s12, 6144, %s2255_s30, [#allocation12], %s2072_s10, %s2072_s10, %s2073_s24  }
  0x73   :  { %2050 = dma.done.wait [#allocation3], 2048  }
  0x74   :  { %2051 = vsyncadd [#allocation3], 4294965248 }
  0x75   :  { %2052 = dma.done.wait [#allocation6], 2048  }
  0x76   :  { %2053 = vsyncadd [#allocation6], 4294965248 }
  0x77   :  { %2054 = dma.done.wait [#allocation9], 2048  }
  0x78   :  { %2055 = vsyncadd [#allocation9], 4294965248 }
  0x79   :  { %2056 = dma.done.wait [#allocation12], 6144  }
  0x7a   :  { %2057 = vsyncadd [#allocation12], 4294961152  ;;  %v2074_v0 = vmov 0.0   ;;  %v1661_v1 = vld [vmem:[#allocation2 + $0x40] sm:$0xff]   ;;  %v1663_v3 = vld [vmem:[#allocation2 + $0x48] sm:$0xff]   ;;  %s2481_s18 = sld [smem:[#allocation27_spill]] }
  0x7b   :  { %1557 = vmatprep.subr.bf16.mxu1 %v2074_v0  ;;  %v1662_v2 = vld [vmem:[#allocation2] sm:$0xff]   ;;  %1499 = vmatprep.subr.bf16.mxu0 %v1661_v1  ;;  %v1664_v4 = vld [vmem:[#allocation2 + $0x8] sm:$0xff]   ;;  %v1665_v5 = vld [vmem:[#allocation2 + $0x50] sm:$0xff]   ;;  %vm2075_vm0 = vmmov 0   ;;  %s2482_s8 = sld [smem:[#allocation28_spill]]  ;;  %s2077_s23 = smov [#allocation17]  }
  0x7c   :  { %1500 = vmatpush3.bf16.msra.mxu0 %v1662_v2  ;;  %v1666_v6 = vld [vmem:[#allocation2 + $0x10] sm:$0xff]   ;;  %v1667_v7 = vld [vmem:[#allocation2 + $0x58] sm:$0xff]   ;;  %v1669_v9 = vld [vmem:[#allocation2 + $0x60] sm:$0xff]   ;;  %1573 = vmatprep.mubr.msk.bf16.mxu1 %vm2075_vm0, %v2074_v0  ;;  %s1355_s10 = sshll.u32 %s2077_s23, 4  ;;  %s1356_s10 = int_to_ptr.vmem [resolvable:$true] %s1355_s10 }
  0x7d   :  { %1501 = vmatprep.subr.bf16.mxu0 %v1663_v3  ;;  %v1668_v8 = vld [vmem:[#allocation2 + $0x18] sm:$0xff]   ;;  %v1670_v10 = vld [vmem:[#allocation2 + $0x20] sm:$0xff]   ;;  %v1671_v11 = vld [vmem:[#allocation2 + $0x68] sm:$0xff]   ;;  %s1940_s24 = scalar_lea.vmem %s1356_s10, 512  ;;  %p1945_p7 = scmp.lt.s32.totalorder %s1356_s10, %s1356_s10 }
  0x7e   :  { %v1672_v12 = vld [vmem:[#allocation2 + $0x28] sm:$0xff]   ;;  %v1680_v14 = vld [vmem:[#allocation5] sm:$0xff]   ;;  %v1673_v15 = vld [vmem:[#allocation2 + $0x70] sm:$0xff]   ;;  %p1941_p6 = scmp.ne.s32.totalorder %s1356_s10, %s1940_s24  ;;  %p1946_p8 = scmp.lt.s32.totalorder %s1940_s24, %s1940_s24 }
  0x7f   :  { %1558 = vmatpush3.bf16.msra.mxu1 %v1680_v14  ;;  %v1681_v16 = vld [vmem:[#allocation5 + $0x8] sm:$0xff]   ;;  %v1674_v17 = vld [vmem:[#allocation2 + $0x30] sm:$0xff]   ;;  %v1675_v18 = vld [vmem:[#allocation2 + $0x78] sm:$0xff]  }
  0x80   :  { %1502 = vmatpush3.bf16.msra.mxu0 %v1664_v4  ;;  %v1679_v13 = vld [vmem:[%s2481_s18 + $0x4] ss:$8 sps:$4 sm:$0xff]   ;;  %1559 = vmatprep.subr.bf16.mxu1 %v2074_v0  ;;  %v1682_v19 = vld [vmem:[#allocation5 + $0x10] sm:$0xff]   ;;  %v1676_v20 = vld [vmem:[#allocation2 + $0x38] sm:$0xff]   ;;  %p1947_p9 = por %p1946_p8, %p1945_p7 }
  0x81   :  { %1503 = vmatprep.subr.bf16.mxu0 %v1665_v5  ;;  %317 = vmatprep.mubr.bf16.mxu0 %v1679_v13  ;;  %v1683_v21 = vld [vmem:[#allocation5 + $0x18] sm:$0xff]   ;;  %v1677_v22 = vld [vmem:[%s2481_s18] ss:$8 sps:$4 sm:$0xff]   ;;  %v1686_v25 = vld [vmem:[#allocation5 + $0x30] sm:$0xff]  }
  0x82   :  { %v1684_v23 = vld [vmem:[#allocation5 + $0x20] sm:$0xff]   ;;  %v1685_v24 = vld [vmem:[#allocation5 + $0x28] sm:$0xff]   ;;  %v1687_v26 = vld [vmem:[#allocation5 + $0x38] sm:$0xff]   ;;  %p1948_p10 = pnand %p1947_p9, %p1941_p6 }
  0x83   :  { %1560 = vmatpush3.bf16.msra.mxu1 %v1681_v16  ;;  %v1688_v27 = vld [vmem:[#allocation7] sm:$0xff]   ;;  %v1689_v28 = vld [vmem:[#allocation7 + $0x8] sm:$0xff]   ;;  %v1690_v29 = vld [vmem:[#allocation7 + $0x10] sm:$0xff]  }
  0x84   :  { %1504 = vmatpush3.bf16.msra.mxu0 %v1666_v6  ;;  %1561 = vmatprep.subr.bf16.mxu1 %v2074_v0  ;;  %v1691_v30 = vld [vmem:[#allocation7 + $0x18] sm:$0xff]   ;;  %v1692_v31 = vld [vmem:[#allocation7 + $0x20] sm:$0xff]   ;;  %v1693_v32 = vld [vmem:[#allocation7 + $0x28] sm:$0xff]  }
  0x85   :  { %1505 = vmatprep.subr.bf16.mxu0 %v1667_v7  ;;  %v1396_v34 = vld [vmem:[%s2456_s3] ss:$0 sm:$0xff]  ;;  %v1694_v45 = vld [vmem:[#allocation7 + $0x30] sm:$0xff]   ;;  %v1695_v46 = vld [vmem:[#allocation7 + $0x38] sm:$0xff]  }
  0x86   :  { %v1696_v47 = vld [vmem:[#allocation8] sm:$0xff]   ;;  %v1697_v48 = vld [vmem:[#allocation8 + $0x8] sm:$0xff]   ;;  %v1698_v49 = vld [vmem:[#allocation8 + $0x10] sm:$0xff]  }
  0x87   :  { %1562 = vmatpush3.bf16.msra.mxu1 %v1682_v19  ;;  %v1699_v50 = vld [vmem:[#allocation8 + $0x18] sm:$0xff]   ;;  %v1700_v51 = vld [vmem:[#allocation8 + $0x20] sm:$0xff]   ;;  %v1701_v52 = vld [vmem:[#allocation8 + $0x28] sm:$0xff]  }
  0x88   :  { %1506 = vmatpush3.bf16.msra.mxu0 %v1668_v8  ;;  %1563 = vmatprep.subr.bf16.mxu1 %v2074_v0  ;;  %v1415_v53 = vld [vmem:[%s2458_s5] ss:$0 sm:$0xff]  ;;  %v1702_v63 = vld [vmem:[#allocation8 + $0x30] sm:$0xff]   ;;  %v1703_v1 = vld [vmem:[#allocation8 + $0x38] sm:$0xff]  }
  0x89   :  { %1507 = vmatprep.subr.bf16.mxu0 %v1669_v9  ;;  %v1704_v2 = vld [vmem:[#allocation10] sm:$0xff]   ;;  %v1705_v3 = vld [vmem:[#allocation10 + $0x8] sm:$0xff]   ;;  %v1706_v4 = vld [vmem:[#allocation10 + $0x10] sm:$0xff]  }
  0x8a   :  { %v1707_v5 = vld [vmem:[#allocation10 + $0x18] sm:$0xff]   ;;  %v1708_v6 = vld [vmem:[#allocation10 + $0x20] sm:$0xff]   ;;  %v1709_v7 = vld [vmem:[#allocation10 + $0x28] sm:$0xff]  }
  0x8b   :  { %1564 = vmatpush3.bf16.msra.mxu1 %v1683_v21  ;;  %v1424_v8 = vld [vmem:[%s2460_s7] ss:$0 sm:$0xff]  ;;  %v1711_v19 = vld [vmem:[#allocation10 + $0x38] sm:$0xff]  }
  0x8c   :  { %1508 = vmatpush3.bf16.msra.mxu0 %v1670_v10  ;;  %1565 = vmatprep.subr.bf16.mxu1 %v2074_v0  ;;  %v1714_v21 = vld [vmem:[#allocation11 + $0x4] ss:$24 sps:$4 sm:$0xff]  }
  0x8d   :  { %1509 = vmatprep.subr.bf16.mxu0 %v1671_v11 }
  0x8f   :  { %1566 = vmatpush3.bf16.msra.mxu1 %v1684_v23  ;;  %v1720_v23 = vld [vmem:[#allocation11 + $0x34] ss:$24 sps:$4 sm:$0xff]  }
  0x90   :  { %1510 = vmatpush3.bf16.msra.mxu0 %v1672_v12  ;;  %1567 = vmatprep.subr.bf16.mxu1 %v2074_v0 }
  0x91   :  { %1511 = vmatprep.subr.bf16.mxu0 %v1673_v15 }
  0x93   :  { %1568 = vmatpush3.bf16.msra.mxu1 %v1685_v24  ;;  %v1718_v24 = vld [vmem:[#allocation11 + $0x30] ss:$24 sps:$4 sm:$0xff]  }
  0x94   :  { %1512 = vmatpush3.bf16.msra.mxu0 %v1674_v17  ;;  %1569 = vmatprep.subr.bf16.mxu1 %v2074_v0 }
  0x95   :  { %1513 = vmatprep.subr.bf16.mxu0 %v1675_v18  ;;  %v1710_v18 = vld [vmem:[#allocation10 + $0x30] sm:$0xff]  }
  0x97   :  { %1570 = vmatpush3.bf16.msra.mxu1 %v1686_v25  ;;  %v1726_v25 = vld [vmem:[#allocation11 + $0x64] ss:$24 sps:$4 sm:$0xff]  }
  0x98   :  { %1514 = vmatpush3.bf16.msra.mxu0 %v1676_v20  ;;  %1571 = vmatprep.subr.bf16.mxu1 %v2074_v0  ;;  %v1712_v20 = vld [vmem:[#allocation11] ss:$24 sps:$4 sm:$0xff]  }
  0x99   :  { %1577 = vmatprep.subr.bf16.mxu0 %v2074_v0 }
  0x9b   :  { %318 = vmatmul.mubr.bf16.vlgmr.msra.gmra.mrb[0].mxu0 %v1677_v22  ;;  %1572 = vmatpush3.bf16.msra.mxu1 %v1687_v26  ;;  %v1717_v22 = vld [vmem:[#allocation11 + $0xc] ss:$24 sps:$4 sm:$0xff]   ;;  %v1724_v26 = vld [vmem:[#allocation11 + $0x60] ss:$24 sps:$4 sm:$0xff]  }
  0x9c   :  { %1593 = vmatprep.mubr.msk.bf16.mxu0 %vm2075_vm0, %v2074_v0  ;;  %1597 = vmatprep.subr.bf16.mxu1 %v2074_v0 }
  0x9d   :  { %1578 = vmatpush3.bf16.msra.mxu0 %v1688_v27  ;;  %v1732_v27 = vld [vmem:[#allocation11 + $0x94] ss:$24 sps:$4 sm:$0xff]  }
  0x9e   :  { %1579 = vmatprep.subr.bf16.mxu0 %v2074_v0 }
  0xa1   :  { %1580 = vmatpush3.bf16.msra.mxu0 %v1689_v28  ;;  %v1730_v28 = vld [vmem:[#allocation11 + $0x90] ss:$24 sps:$4 sm:$0xff]  }
  0xa2   :  { %1581 = vmatprep.subr.bf16.mxu0 %v2074_v0 }
  0xa5   :  { %1582 = vmatpush3.bf16.msra.mxu0 %v1690_v29  ;;  %v1736_v29 = vld [vmem:[#allocation11 + $0xc0] ss:$24 sps:$4 sm:$0xff]  }
  0xa6   :  { %1583 = vmatprep.subr.bf16.mxu0 %v2074_v0 }
  0xa9   :  { %1584 = vmatpush3.bf16.msra.mxu0 %v1691_v30  ;;  %v1744_v30 = vld [vmem:[#allocation11 + $0xf4] ss:$24 sps:$4 sm:$0xff]  }
  0xaa   :  { %1585 = vmatprep.subr.bf16.mxu0 %v2074_v0 }
  0xad   :  { %1586 = vmatpush3.bf16.msra.mxu0 %v1692_v31  ;;  %v1742_v31 = vld [vmem:[#allocation11 + $0xf0] ss:$24 sps:$4 sm:$0xff]  }
  0xae   :  { %1587 = vmatprep.subr.bf16.mxu0 %v2074_v0 }
  0xb1   :  { %1588 = vmatpush3.bf16.msra.mxu0 %v1693_v32  ;;  %v1433_v32 = vld [vmem:[%s2462_s9] ss:$0 sm:$0xff] }
  0xb2   :  { %1589 = vmatprep.subr.bf16.mxu0 %v2074_v0 }
  0xb5   :  { %1590 = vmatpush3.bf16.msra.mxu0 %v1694_v45  ;;  %v1729_v45 = vld [vmem:[#allocation11 + $0x6c] ss:$24 sps:$4 sm:$0xff]  }
  0xb6   :  { %1591 = vmatprep.subr.bf16.mxu0 %v2074_v0 }
  0xb9   :  { %1592 = vmatpush3.bf16.msra.mxu0 %v1695_v46  ;;  %v1727_v46 = vld [vmem:[#allocation11 + $0x68] ss:$24 sps:$4 sm:$0xff]  }
  0xba   :  { %1617 = vmatprep.subr.bf16.mxu0 %v2074_v0 }
 0x16e   :  { %v1515_v33 = vpop.f32.mrb[0].mxu0 }
 0x16f   :  { %v1516_v35 = vpop.f32.mrb[1].mxu0 }
 0x170   :  { %v1517_v36 = vadd.f32 %v1516_v35, %v1515_v33  ;;  %v1518_v37 = vpop.f32.mrb[2].mxu0 }
 0x171   :  { %v1519_v38 = vpop.f32.mrb[3].mxu0 }
 0x172   :  { %v320_v39 = vadd.f32 %v1517_v36, %v1396_v34  ;;  %v1520_v40 = vadd.f32 %v1519_v38, %v1518_v37 }
 0x174   :  { %v323_v41 = vadd.f32 %v1520_v40, %v1396_v34  ;;  %v326_v42 = vmax.f32 %v320_v39, 0.0 }
 0x176   :  { %v327_v43 = vmax.f32 %v323_v41, 0.0  ;;  %v1715_v41 = vld [vmem:[#allocation11 + $0x8] ss:$24 sps:$4 sm:$0xff]  }
 0x178   :  { %v328_v44 = vpack.c.bf16 %v327_v43, %v326_v42  ;;  %v1723_v43 = vld [vmem:[#allocation11 + $0x3c] ss:$24 sps:$4 sm:$0xff]  }
 0x17a   :  { %1574 = vmatmul.mubr.bf16.vlgmr.msra.gmra.mrb[0].mxu1 %v328_v44  ;;  %v1721_v44 = vld [vmem:[#allocation11 + $0x38] ss:$24 sps:$4 sm:$0xff]  }
 0x17b   :  { %1613 = vmatprep.mubr.msk.bf16.mxu1 %vm2075_vm0, %v2074_v0  ;;  %1598 = vmatpush3.bf16.msra.mxu1 %v1696_v47  ;;  %v1735_v47 = vld [vmem:[#allocation11 + $0x9c] ss:$24 sps:$4 sm:$0xff]  }
 0x17c   :  { %1599 = vmatprep.subr.bf16.mxu1 %v2074_v0 }
 0x17f   :  { %1600 = vmatpush3.bf16.msra.mxu1 %v1697_v48  ;;  %v1733_v48 = vld [vmem:[#allocation11 + $0x98] ss:$24 sps:$4 sm:$0xff]  }
 0x180   :  { %1601 = vmatprep.subr.bf16.mxu1 %v2074_v0 }
 0x183   :  { %1602 = vmatpush3.bf16.msra.mxu1 %v1698_v49  ;;  %v1741_v49 = vld [vmem:[#allocation11 + $0xcc] ss:$24 sps:$4 sm:$0xff]  }
 0x184   :  { %1603 = vmatprep.subr.bf16.mxu1 %v2074_v0 }
 0x187   :  { %1604 = vmatpush3.bf16.msra.mxu1 %v1699_v50  ;;  %v1739_v50 = vld [vmem:[#allocation11 + $0xc8] ss:$24 sps:$4 sm:$0xff]  }
 0x188   :  { %1605 = vmatprep.subr.bf16.mxu1 %v2074_v0 }
 0x18b   :  { %1606 = vmatpush3.bf16.msra.mxu1 %v1700_v51  ;;  %v1747_v51 = vld [vmem:[#allocation11 + $0xfc] ss:$24 sps:$4 sm:$0xff]  }
 0x18c   :  { %1607 = vmatprep.subr.bf16.mxu1 %v2074_v0 }
 0x18f   :  { %1608 = vmatpush3.bf16.msra.mxu1 %v1701_v52  ;;  %v1745_v52 = vld [vmem:[#allocation11 + $0xf8] ss:$24 sps:$4 sm:$0xff]  }
 0x190   :  { %1609 = vmatprep.subr.bf16.mxu1 %v2074_v0 }
 0x193   :  { %1610 = vmatpush3.bf16.msra.mxu1 %v1702_v63  ;;  %v1442_v63 = vld [vmem:[%s2464_s11] ss:$0 sm:$0xff] }
 0x194   :  { %1611 = vmatprep.subr.bf16.mxu1 %v2074_v0 }
 0x197   :  { %1612 = vmatpush3.bf16.msra.mxu1 %v1703_v1 }
 0x198   :  { %1111 = vmatprep.subr.bf16.mxu1 %v1714_v21  ;;  %v1780_v21 = vld [vmem:[#allocation11 + $0x134] ss:$24 sps:$4 sm:$0xff]  }
 0x24d   :  { %v434_v54 = vpop.f32.mrb[0].mxu1 }
 0x24e   :  { %v435_v55 = vadd.f32 %v1415_v53, %v434_v54  ;;  %v1575_v56 = vpop.f32.mrb[1].mxu1  ;;  %v1748_v54 = vld [vmem:[#allocation11 + $0x120] ss:$24 sps:$4 sm:$0xff]  }
 0x24f   :  { %v437_v57 = vpop.f32.mrb[2].mxu1  ;;  %v1751_v56 = vld [vmem:[#allocation11 + $0x128] ss:$24 sps:$4 sm:$0xff]  }
 0x250   :  { %v438_v58 = vadd.f32 %v1415_v53, %v437_v57  ;;  %v1576_v59 = vpop.f32.mrb[3].mxu1  ;;  %v441_v60 = vmax.f32 %v435_v55, 0.0  ;;  %v1750_v53 = vld [vmem:[#allocation11 + $0x124] ss:$24 sps:$4 sm:$0xff]   ;;  %v1756_v57 = vld [vmem:[#allocation11 + $0x154] ss:$24 sps:$4 sm:$0xff]  }
 0x251   :  { %v1753_v55 = vld [vmem:[#allocation11 + $0x12c] ss:$24 sps:$4 sm:$0xff]   ;;  %v1759_v59 = vld [vmem:[#allocation11 + $0x15c] ss:$24 sps:$4 sm:$0xff]  }
 0x252   :  { %v442_v61 = vmax.f32 %v438_v58, 0.0  ;;  %v1754_v58 = vld [vmem:[#allocation11 + $0x150] ss:$24 sps:$4 sm:$0xff]  }
 0x254   :  { %v443_v62 = vpack.c.bf16 %v442_v61, %v441_v60  ;;  %v1757_v60 = vld [vmem:[#allocation11 + $0x158] ss:$24 sps:$4 sm:$0xff]   ;;  %v1762_v61 = vld [vmem:[#allocation11 + $0x14] ss:$24 sps:$4 sm:$0xff]  }
 0x256   :  { %1594 = vmatmul.mubr.bf16.vlgmr.msra.gmra.mrb[4].mxu0 %v443_v62  ;;  %v2076_v62 = vmov 0  }
 0x257   :  { %1633 = vmatprep.mubr.msk.bf16.mxu0 %vm2075_vm0, %v2074_v0  ;;  %1618 = vmatpush3.bf16.msra.mxu0 %v1704_v2 }
 0x258   :  { %1619 = vmatprep.subr.bf16.mxu0 %v2074_v0  ;;  %1659 = vset.pattern.permute.xlu0 %v2076_v62 }
 0x259   :  { %1660 = vset.pattern.permute.xlu1 %v2076_v62 }
 0x25b   :  { %1620 = vmatpush3.bf16.msra.mxu0 %v1705_v3 }
 0x25c   :  { %1621 = vmatprep.subr.bf16.mxu0 %v2074_v0 }
 0x25f   :  { %1622 = vmatpush3.bf16.msra.mxu0 %v1706_v4 }
 0x260   :  { %1623 = vmatprep.subr.bf16.mxu0 %v2074_v0 }
 0x263   :  { %1624 = vmatpush3.bf16.msra.mxu0 %v1707_v5 }
 0x264   :  { %1625 = vmatprep.subr.bf16.mxu0 %v2074_v0 }
 0x267   :  { %1626 = vmatpush3.bf16.msra.mxu0 %v1708_v6 }
 0x268   :  { %1627 = vmatprep.subr.bf16.mxu0 %v2074_v0 }
 0x26b   :  { %1628 = vmatpush3.bf16.msra.mxu0 %v1709_v7 }
 0x26c   :  { %1629 = vmatprep.subr.bf16.mxu0 %v2074_v0 }
 0x26f   :  { %1630 = vmatpush3.bf16.msra.mxu0 %v1710_v18  ;;  %v1772_v18 = vld [vmem:[#allocation11 + $0xd0] ss:$24 sps:$4 sm:$0xff]  }
 0x270   :  { %1631 = vmatprep.subr.bf16.mxu0 %v2074_v0  ;;  %v1738_v0 = vld [vmem:[#allocation11 + $0xc4] ss:$24 sps:$4 sm:$0xff]  }
 0x273   :  { %1632 = vmatpush3.bf16.msra.mxu0 %v1711_v19  ;;  %v1777_v19 = vld [vmem:[#allocation11 + $0x104] ss:$24 sps:$4 sm:$0xff]  }
 0x274   :  { %1154 = vmatprep.subr.bf16.mxu0 %v1717_v22  ;;  %v1778_v22 = vld [vmem:[#allocation11 + $0x130] ss:$24 sps:$4 sm:$0xff]  }
 0x329   :  { %v549_v9 = vpop.f32.mrb[4].mxu0 }
 0x32a   :  { %v550_v10 = vadd.f32 %v1424_v8, %v549_v9  ;;  %v1595_v11 = vpop.f32.mrb[5].mxu0  ;;  %v1760_v9 = vld [vmem:[#allocation11 + $0x10] ss:$24 sps:$4 sm:$0xff]  }
 0x32b   :  { %v552_v12 = vpop.f32.mrb[6].mxu0  ;;  %v1765_v11 = vld [vmem:[#allocation11 + $0x44] ss:$24 sps:$4 sm:$0xff]  }
 0x32c   :  { %v556_v13 = vmax.f32 %v550_v10, 0.0  ;;  %v553_v14 = vadd.f32 %v1424_v8, %v552_v12  ;;  %v1596_v15 = vpop.f32.mrb[7].mxu0  ;;  %v1763_v12 = vld [vmem:[#allocation11 + $0x40] ss:$24 sps:$4 sm:$0xff]  }
 0x32d   :  { %v1771_v15 = vld [vmem:[#allocation11 + $0xa4] ss:$24 sps:$4 sm:$0xff]  }
 0x32e   :  { %558 = vst [vmem:[#allocation13] sm:$0xff] %v556_v13  ;;  %v557_v16 = vmax.f32 %v553_v14, 0.0  ;;  %v1766_v14 = vld [vmem:[#allocation11 + $0x70] ss:$24 sps:$4 sm:$0xff]  }
 0x330   :  { %559 = vst [vmem:[#allocation13 + $0x8] sm:$0xff] %v557_v16  ;;  %v560_v17 = vpack.c.bf16 %v557_v16, %v556_v13  ;;  %v1768_v13 = vld [vmem:[#allocation11 + $0x74] ss:$24 sps:$4 sm:$0xff]   ;;  %v1769_v16 = vld [vmem:[#allocation11 + $0xa0] ss:$24 sps:$4 sm:$0xff]  }
 0x332   :  { %1614 = vmatmul.mubr.bf16.vlgmr.msra.gmra.mrb[4].mxu1 %v560_v17  ;;  %v1774_v17 = vld [vmem:[#allocation11 + $0xd4] ss:$24 sps:$4 sm:$0xff]  }
 0x333   :  { %1112 = vmatpush1.bf16.msra.mxu1 %v1712_v20  ;;  %1143 = vmatprep.mubr.bf16.mxu1 %v2076_v62  ;;  %v1775_v20 = vld [vmem:[#allocation11 + $0x100] ss:$24 sps:$4 sm:$0xff]  }
 0x334   :  { %1113 = vmatprep.subr.bf16.mxu1 %v1720_v23  ;;  %v1783_v23 = vld [vmem:[#allocation11 + $0x164] ss:$24 sps:$4 sm:$0xff]  }
 0x337   :  { %1114 = vmatpush1.bf16.msra.mxu1 %v1718_v24  ;;  %v1781_v24 = vld [vmem:[#allocation11 + $0x160] ss:$24 sps:$4 sm:$0xff]  }
 0x338   :  { %1115 = vmatprep.subr.bf16.mxu1 %v1726_v25  ;;  %v841_v25 = vlaneseq }
 0x33b   :  { %1116 = vmatpush1.bf16.msra.mxu1 %v1724_v26  ;;  %v842_v26 = vshrl.u32 %v841_v25, 7 }
 0x33c   :  { %1117 = vmatprep.subr.bf16.mxu1 %v1732_v27 }
 0x33d   :  { %v843_v27 = vsub.s32 0, %v842_v26 }
 0x33f   :  { %1118 = vmatpush1.bf16.msra.mxu1 %v1730_v28  ;;  %v851_v28 = vsub.s32 2, %v842_v26 }
 0x340   :  { %1119 = vmatprep.subr.bf16.mxu1 %v1738_v0  ;;  %v839_v0 = vld [vmem:[%s2466_s13] sm:$0x3f] }
 0x343   :  { %1120 = vmatpush1.bf16.msra.mxu1 %v1736_v29  ;;  %v847_v29 = vsub.s32 1, %v842_v26 }
 0x344   :  { %1121 = vmatprep.subr.bf16.mxu1 %v1744_v30  ;;  %v855_v30 = vsub.s32 3, %v842_v26 }
 0x347   :  { %1122 = vmatpush1.bf16.msra.mxu1 %v1742_v31  ;;  %v844_v31 = vrot.slane %v839_v0, %v843_v27 }
 0x348   :  { %1123 = vmatprep.subr.bf16.mxu1 %v1750_v53 }
 0x34b   :  { %1124 = vmatpush1.bf16.msra.mxu1 %v1748_v54 }
 0x34c   :  { %1125 = vmatprep.subr.bf16.mxu1 %v1756_v57 }
 0x34f   :  { %1126 = vmatpush1.bf16.msra.mxu1 %v1754_v58 }
 0x350   :  { %1197 = vmatprep.subr.bf16.mxu1 %v1762_v61  ;;  %v859_v61 = vsub.s32 4, %v842_v26 }
 0x405   :  { %v666_v33 = vpop.f32.mrb[4].mxu1 }
 0x406   :  { %v667_v34 = vadd.f32 %v1433_v32, %v666_v33  ;;  %v1615_v35 = vpop.f32.mrb[5].mxu1  ;;  %v848_v33 = vrot.slane %v839_v0, %v847_v29 }
 0x407   :  { %v669_v36 = vpop.f32.mrb[6].mxu1 }
 0x408   :  { %v670_v37 = vadd.f32 %v1433_v32, %v669_v36  ;;  %v1616_v38 = vpop.f32.mrb[7].mxu1  ;;  %v673_v39 = vmax.f32 %v667_v34, 0.0  ;;  %v852_v32 = vrot.slane %v839_v0, %v851_v28  ;;  %v856_v34 = vrot.slane %v839_v0, %v855_v30  ;;  %v1291_v28 = vld [vmem:[%s2482_s8 + $0x8] sm:$0xff] }
 0x409   :  { %v1294_v29 = vmul.f32 1.442695, %v1291_v28 }
 0x40a   :  { %v674_v40 = vmax.f32 %v670_v37, 0.0 }
 0x40c   :  { %v675_v42 = vpack.c.bf16 %v674_v40, %v673_v39 }
 0x40e   :  { %1634 = vmatmul.mubr.bf16.vlgmr.msra.gmra.mrb[8].mxu0 %v675_v42 }
 0x40f   :  { %1155 = vmatpush1.bf16.msra.mxu0 %v1715_v41  ;;  %1186 = vmatprep.mubr.bf16.mxu0 %v2076_v62 }
 0x410   :  { %1156 = vmatprep.subr.bf16.mxu0 %v1723_v43 }
 0x413   :  { %1157 = vmatpush1.bf16.msra.mxu0 %v1721_v44 }
 0x414   :  { %1158 = vmatprep.subr.bf16.mxu0 %v1729_v45 }
 0x417   :  { %1159 = vmatpush1.bf16.msra.mxu0 %v1727_v46 }
 0x418   :  { %1160 = vmatprep.subr.bf16.mxu0 %v1735_v47 }
 0x41b   :  { %1161 = vmatpush1.bf16.msra.mxu0 %v1733_v48 }
 0x41c   :  { %1162 = vmatprep.subr.bf16.mxu0 %v1741_v49 }
 0x41f   :  { %1163 = vmatpush1.bf16.msra.mxu0 %v1739_v50 }
 0x420   :  { %1164 = vmatprep.subr.bf16.mxu0 %v1747_v51 }
 0x423   :  { %1165 = vmatpush1.bf16.msra.mxu0 %v1745_v52 }
 0x424   :  { %1166 = vmatprep.subr.bf16.mxu0 %v1753_v55 }
 0x427   :  { %1167 = vmatpush1.bf16.msra.mxu0 %v1751_v56 }
 0x428   :  { %1168 = vmatprep.subr.bf16.mxu0 %v1759_v59 }
 0x42b   :  { %1169 = vmatpush1.bf16.msra.mxu0 %v1757_v60 }
 0x4e1   :  { %v781_v1 = vpop.f32.mrb[8].mxu0 }
 0x4e2   :  { %v782_v2 = vadd.f32 %v1442_v63, %v781_v1  ;;  %v1635_v3 = vpop.f32.mrb[9].mxu0 }
 0x4e3   :  { %v784_v4 = vpop.f32.mrb[10].mxu0 }
 0x4e4   :  { %v785_v5 = vadd.f32 %v1442_v63, %v784_v4  ;;  %v1636_v6 = vpop.f32.mrb[11].mxu0  ;;  %v788_v7 = vmax.f32 %v782_v2, 0.0  ;;  %v860_v63 = vrot.slane %v839_v0, %v859_v61 }
 0x4e6   :  { %v789_v8 = vmax.f32 %v785_v5, 0.0 }
 0x4e8   :  { %v790_v10 = vpack.c.bf16 %v789_v8, %v788_v7 }
 0x4ea   :  { %1144 = vmatmul.mubr.bf16.vlgmr.msra.gmra.mrb[8].mxu1 %v790_v10  ;;  %1187 = vmatmul.mubr.bf16.vlgmr.msra.gmra.mrb[12].mxu0 %v790_v10 }
 0x4eb   :  { %1198 = vmatpush1.bf16.msra.mxu1 %v1760_v9  ;;  %1229 = vmatprep.mubr.bf16.mxu1 %v2076_v62  ;;  %v863_v62 = vsub.s32 5, %v842_v26 }
 0x4ec   :  { %1199 = vmatprep.subr.bf16.mxu1 %v1765_v11 }
 0x4ed   :  { %v864_v1 = vrot.slane %v839_v0, %v863_v62 }
 0x4ef   :  { %1200 = vmatpush1.bf16.msra.mxu1 %v1763_v12 }
 0x4f0   :  { %1201 = vmatprep.subr.bf16.mxu1 %v1768_v13 }
 0x4f3   :  { %1202 = vmatpush1.bf16.msra.mxu1 %v1766_v14 }
 0x4f4   :  { %1203 = vmatprep.subr.bf16.mxu1 %v1771_v15 }
 0x4f7   :  { %1204 = vmatpush1.bf16.msra.mxu1 %v1769_v16 }
 0x4f8   :  { %1205 = vmatprep.subr.bf16.mxu1 %v1774_v17 }
 0x4fb   :  { %1206 = vmatpush1.bf16.msra.mxu1 %v1772_v18 }
 0x4fc   :  { %1207 = vmatprep.subr.bf16.mxu1 %v1777_v19 }
 0x4ff   :  { %1208 = vmatpush1.bf16.msra.mxu1 %v1775_v20 }
 0x500   :  { %1209 = vmatprep.subr.bf16.mxu1 %v1780_v21 }
 0x503   :  { %1210 = vmatpush1.bf16.msra.mxu1 %v1778_v22 }
 0x504   :  { %1211 = vmatprep.subr.bf16.mxu1 %v1783_v23 }
 0x507   :  { %1212 = vmatpush1.bf16.msra.mxu1 %v1781_v24 }
 0x50a   :  { %1230 = vmatmul.mubr.bf16.vlgmr.msra.gmra.mrb[12].mxu1 %v790_v10  ;;  %v1290_v10 = vld [vmem:[%s2482_s8] sm:$0xff] }
 0x50b   :  { %v1292_v11 = vmul.f32 1.442695, %v1290_v10 }
 0x5bd   :  { %v1145_v35 = vpop.f32.mrb[8].mxu1  ;;  %v1188_v36 = vpop.f32.mrb[12].mxu0 }
 0x5be   :  { %v1146_v37 = vadd.f32 %v1145_v35, %v844_v31  ;;  %v1189_v38 = vadd.f32 %v1188_v36, %v852_v32  ;;  %v1147_v39 = vpop.f32.mrb[9].mxu1  ;;  %v1190_v40 = vpop.f32.mrb[13].mxu0 }
 0x5bf   :  { %v1148_v41 = vadd.f32 %v1147_v39, %v848_v33  ;;  %v1191_v42 = vadd.f32 %v1190_v40, %v856_v34  ;;  %v1149_v43 = vpop.f32.mrb[10].mxu1  ;;  %v1192_v44 = vpop.f32.mrb[14].mxu0 }
 0x5c0   :  { %v1244_v45 = vmul.f32 1.442695, %v1189_v38  ;;  %v1150_v46 = vadd.f32 %v1149_v43, %v844_v31  ;;  %v1193_v47 = vadd.f32 %v1192_v44, %v852_v32  ;;  %v1151_v48 = vpop.f32.mrb[11].mxu1  ;;  %v1194_v49 = vpop.f32.mrb[15].mxu0 }
 0x5c1   :  { %v1246_v50 = vmul.f32 1.442695, %v1191_v42  ;;  %v1152_v51 = vadd.f32 %v1151_v48, %v848_v33  ;;  %v1195_v52 = vadd.f32 %v1194_v49, %v856_v34  ;;  %v1256_v53 = vmax.f32 %v1146_v37, %v1148_v41 }
 0x5c2   :  { %1784 = vpow2.f32 %v1244_v45  ;;  %v1248_v54 = vmul.f32 1.442695, %v1193_v47 }
 0x5c3   :  { %1786 = vpow2.f32 %v1246_v50  ;;  %v1250_v55 = vmul.f32 1.442695, %v1195_v52  ;;  %1257 = vmax.xlane.f32.xlu0 %v1256_v53  ;;  %v1259_v56 = vmax.f32 %v1150_v46, %v1152_v51 }
 0x5c4   :  { %1788 = vpow2.f32 %v1248_v54 }
 0x5c5   :  { %1790 = vpow2.f32 %v1250_v55 }
 0x5c6   :  { %1792 = vpow2.f32 %v1292_v11 }
 0x5c7   :  { %1260 = vmax.xlane.f32.xlu0 %v1259_v56 }
 0x5cc   :  { %v1785_v57 = vpop.eup %1784 }
 0x5cd   :  { %v1787_v58 = vpop.eup %1786  ;;  %1252 = vst [vmem:[#allocation17] sm:$0xff] %v1785_v57 }
 0x5ce   :  { %v1789_v59 = vpop.eup %1788  ;;  %1253 = vst [vmem:[#allocation17 + $0x8] sm:$0xff] %v1787_v58 }
 0x5cf   :  { %v1791_v60 = vpop.eup %1790  ;;  %1254 = vst [vmem:[#allocation17 + $0x10] sm:$0xff] %v1789_v59 }
 0x5d0   :  { %1255 = vst [vmem:[#allocation17 + $0x18] sm:$0xff] %v1791_v60  ;;  %v1793_v12 = vpop.eup %1792 }
 0x5dd   :  { %v1231_v2 = vpop.f32.mrb[12].mxu1  ;;  %1298 = vperm.xlu0 %1659, %v1793_v12  }
 0x5de   :  { %v1232_v3 = vadd.f32 %v1231_v2, %v860_v63  ;;  %v1233_v4 = vpop.f32.mrb[13].mxu1 }
 0x5df   :  { %v1234_v5 = vadd.f32 %v1233_v4, %v864_v1  ;;  %v1235_v6 = vpop.f32.mrb[14].mxu1 }
 0x5e0   :  { %1240 = vst [vmem:[#allocation16] sm:$0xff] %v1232_v3  ;;  %v1236_v7 = vadd.f32 %v1235_v6, %v860_v63  ;;  %v1237_v8 = vpop.f32.mrb[15].mxu1 }
 0x5e1   :  { %1241 = vst [vmem:[#allocation16 + $0x8] sm:$0xff] %v1234_v5  ;;  %v1238_v9 = vadd.f32 %v1237_v8, %v864_v1 }
 0x5e2   :  { %1242 = vst [vmem:[#allocation16 + $0x10] sm:$0xff] %v1236_v7 }
 0x5e3   :  { %1243 = vst [vmem:[#allocation16 + $0x18] sm:$0xff] %v1238_v9 }
 0x650   :  { %v1258_v13 = vpop.xlane.xlu0 %1257 }
 0x651   :  { %v1262_v14 = vsub.f32 %v1146_v37, %v1258_v13  ;;  %v1263_v15 = vsub.f32 %v1148_v41, %v1258_v13 }
 0x653   :  { %v1266_v16 = vmul.f32 1.442695, %v1262_v14  ;;  %v1268_v17 = vmul.f32 1.442695, %v1263_v15 }
 0x654   :  { %v1261_v18 = vpop.xlane.xlu0 %1260 }
 0x655   :  { %1794 = vpow2.f32 %v1266_v16  ;;  %v1264_v19 = vsub.f32 %v1150_v46, %v1261_v18  ;;  %v1265_v20 = vsub.f32 %v1152_v51, %v1261_v18 }
 0x656   :  { %1796 = vpow2.f32 %v1268_v17 }
 0x657   :  { %v1270_v21 = vmul.f32 1.442695, %v1264_v19  ;;  %v1272_v22 = vmul.f32 1.442695, %v1265_v20 }
 0x659   :  { %1798 = vpow2.f32 %v1270_v21 }
 0x65a   :  { %1800 = vpow2.f32 %v1272_v22 }
 0x65b   :  { %1802 = vpow2.f32 %v1294_v29 }
 0x65f   :  { %v1795_v23 = vpop.eup %1794 }
 0x660   :  { %v1797_v24 = vpop.eup %1796 }
 0x661   :  { %v1274_v25 = vadd.f32 %v1797_v24, %v1795_v23 }
 0x663   :  { %v2356_v26 = vpop.eup %1798  ;;  %1275 = vadd.xlane.f32.xlu1 %v1274_v25 }
 0x664   :  { %v2358_v27 = vpop.eup %1800 }
 0x665   :  { %v1277_v0 = vadd.f32 %v2358_v27, %v2356_v26  ;;  %v1803_v30 = vpop.eup %1802 }
 0x667   :  { %1278 = vadd.xlane.f32.xlu1 %v1277_v0 }
 0x678   :  { %1303 = vperm.xlu1 %1660, %v1803_v30  }
 0x679   :  { %1951 = shalt.err (!%p1948_p10)
}
 0x67a   :  { %s1952_s12 = scalar_lea.hbm %s2470_s17, 512 }
 0x67b   :  { %p1953_p11 = scmp.ne.s32.totalorder %s2470_s17, %s1952_s12  ;;  %p1956_p12 = scmp.lt.u32.totalorder %s1952_s12, %s2470_s17 }
 0x67d   :  { %p1958_p13 = pnand %p1956_p12, %p1953_p11 }
 0x67f   :  { %1961 = shalt.err (!%p1958_p13)
}
 0x680   :  { %s2078_s19 = smov 256   ;;  %s2079_s6 = smov 16  }
 0x681   :  { %1361 = dma.vmem_to_hbm [thread:$0]  %s1356_s10, 512, %s2470_s17, [#allocation18], %s2078_s19, %s2078_s19, %s2079_s6  }
 0x682   :  { %s2080_s5 = smov [#allocation13]  }
 0x683   :  { %s1319_s20 = sshll.u32 %s2080_s5, 4  ;;  %s1320_s20 = int_to_ptr.vmem [resolvable:$true] %s1319_s20 }
 0x684   :  { %s1962_s7 = scalar_lea.vmem %s1320_s20, 256  ;;  %p1967_p1 = scmp.lt.s32.totalorder %s1320_s20, %s1320_s20 }
 0x685   :  { %p1963_p0 = scmp.ne.s32.totalorder %s1320_s20, %s1962_s7  ;;  %p1968_p2 = scmp.lt.s32.totalorder %s1962_s7, %s1962_s7 }
 0x687   :  { %p1969_p3 = por %p1968_p2, %p1967_p1 }
 0x689   :  { %p1970_p4 = pnand %p1969_p3, %p1963_p0 }
 0x68b   :  { %1973 = shalt.err (!%p1970_p4)
}
 0x68c   :  { %s1974_s26 = scalar_lea.hbm %s2467_s14, 256 }
 0x68d   :  { %p1975_p5 = scmp.ne.s32.totalorder %s2467_s14, %s1974_s26  ;;  %p1978_p6 = scmp.lt.u32.totalorder %s1974_s26, %s2467_s14 }
 0x68f   :  { %p1980_p7 = pnand %p1978_p6, %p1975_p5 }
 0x691   :  { %1983 = shalt.err (!%p1980_p7)
}
 0x692   :  { %s2081_s22 = smov 128   ;;  %s2082_s8 = smov 8   ;;  %v1299_v34 = vpop.permute.xlu0 %1298 }
 0x693   :  { %1325 = dma.vmem_to_hbm [thread:$0]  %s1320_s20, 256, %s2467_s14, [#allocation4], %s2081_s22, %s2081_s22, %s2082_s8  }
 0x694   :  { %s2083_s23 = smov [#allocation14]   ;;  %s2084_s24 = smov [#allocation16]  }
 0x695   :  { %s1331_s10 = sshll.u32 %s2083_s23, 4  ;;  %s1343_s25 = sshll.u32 %s2084_s24, 4  ;;  %s1332_s10 = int_to_ptr.vmem [resolvable:$true] %s1331_s10  ;;  %s2394_s25 = int_to_ptr.vmem [resolvable:$true] %s1343_s25 }
 0x696   :  { %s2085_s2 = smov [#allocation19]   ;;  %s1984_s12 = scalar_lea.vmem %s1332_s10, 512 }
 0x697   :  { %s1367_s14 = sshll.u32 %s2085_s2, 4  ;;  %p1985_p8 = scmp.ne.s32.totalorder %s1332_s10, %s1984_s12  ;;  %s2396_s14 = int_to_ptr.vmem [resolvable:$true] %s1367_s14 }
 0x698   :  { %p1989_p9 = scmp.lt.s32.totalorder %s1332_s10, %s1332_s10  ;;  %p1990_p10 = scmp.lt.s32.totalorder %s1984_s12, %s1984_s12 }
 0x69a   :  { %p1991_p11 = por %p1990_p10, %p1989_p9 }
 0x69c   :  { %p1992_p12 = pnand %p1991_p11, %p1985_p8 }
 0x6f0   :  { %v1276_v31 = vpop.xlane.xlu1 %1275 }
 0x6f1   :  { %1804 = vrcp.f32 %v1276_v31 }
 0x6f4   :  { %v1279_v32 = vpop.xlane.xlu1 %1278 }
 0x6f5   :  { %1806 = vrcp.f32 %v1279_v32 }
 0x6f8   :  { %v1304_v40 = vpop.permute.xlu1 %1303 }
 0x6fb   :  { %v1805_v33 = vpop.eup %1804 }
 0x6fc   :  { %v1282_v35 = vmul.f32 %v1805_v33, %v1795_v23  ;;  %v1283_v36 = vmul.f32 %v1805_v33, %v1797_v24 }
 0x6fe   :  { %1286 = vst [vmem:[#allocation14] sm:$0xff] %v1282_v35  ;;  %1287 = vst [vmem:[#allocation14 + $0x8] sm:$0xff] %v1283_v36  ;;  %v1306_v37 = vmul.f32 %v1299_v34, %v1282_v35  ;;  %v1307_v38 = vmul.f32 %v1299_v34, %v1283_v36 }
 0x6ff   :  { %v1807_v39 = vpop.eup %1806 }
 0x700   :  { %1310 = vst [vmem:[#allocation19] sm:$0xff] %v1306_v37  ;;  %1311 = vst [vmem:[#allocation19 + $0x8] sm:$0xff] %v1307_v38  ;;  %v1284_v41 = vmul.f32 %v1807_v39, %v2356_v26  ;;  %v1285_v42 = vmul.f32 %v1807_v39, %v2358_v27 }
 0x702   :  { %1288 = vst [vmem:[#allocation14 + $0x10] sm:$0xff] %v1284_v41  ;;  %1289 = vst [vmem:[#allocation14 + $0x18] sm:$0xff] %v1285_v42  ;;  %v1308_v43 = vmul.f32 %v1304_v40, %v1284_v41  ;;  %v1309_v44 = vmul.f32 %v1304_v40, %v1285_v42 }
 0x703   :  { %1995 = shalt.err (!%p1992_p12)
}
 0x704   :  { %s1996_s27 = scalar_lea.hbm %s2468_s15, 512 }
 0x705   :  { %p1997_p13 = scmp.ne.s32.totalorder %s2468_s15, %s1996_s27  ;;  %p2000_p0 = scmp.lt.u32.totalorder %s1996_s27, %s2468_s15 }
 0x707   :  { %p2002_p1 = pnand %p2000_p0, %p1997_p13 }
 0x709   :  { %2005 = shalt.err (!%p2002_p1)
}
 0x70a   :  { %1337 = dma.vmem_to_hbm [thread:$0]  %s1332_s10, 512, %s2468_s15, [#allocation15], %s2078_s19, %s2078_s19, %s2079_s6   ;;  %1312 = vst [vmem:[#allocation19 + $0x10] sm:$0xff] %v1308_v43  ;;  %1313 = vst [vmem:[#allocation19 + $0x18] sm:$0xff] %v1309_v44 }
 0x70b   :  { %s2006_s21 = scalar_lea.vmem %s2394_s25, 512  ;;  %p2011_p3 = scmp.lt.s32.totalorder %s2394_s25, %s2394_s25 }
 0x70c   :  { %p2007_p2 = scmp.ne.s32.totalorder %s2394_s25, %s2006_s21  ;;  %p2012_p4 = scmp.lt.s32.totalorder %s2006_s21, %s2006_s21 }
 0x70e   :  { %p2013_p5 = por %p2012_p4, %p2011_p3 }
 0x710   :  { %p2014_p6 = pnand %p2013_p5, %p2007_p2 }
 0x712   :  { %2017 = shalt.err (!%p2014_p6)
}
 0x713   :  { %s2018_s11 = scalar_lea.hbm %s2469_s16, 512 }
 0x714   :  { %p2019_p7 = scmp.ne.s32.totalorder %s2469_s16, %s2018_s11  ;;  %p2022_p8 = scmp.lt.u32.totalorder %s2018_s11, %s2469_s16 }
 0x716   :  { %p2024_p9 = pnand %p2022_p8, %p2019_p7 }
 0x718   :  { %2027 = shalt.err (!%p2024_p9)
}
 0x719   :  { %1349 = dma.vmem_to_hbm [thread:$0]  %s2394_s25, 512, %s2469_s16, [#allocation15], %s2078_s19, %s2078_s19, %s2079_s6  }
 0x71a   :  { %s2028_s4 = scalar_lea.vmem %s2396_s14, 512  ;;  %p2033_p11 = scmp.lt.s32.totalorder %s2396_s14, %s2396_s14 }
 0x71b   :  { %p2029_p10 = scmp.ne.s32.totalorder %s2396_s14, %s2028_s4  ;;  %p2034_p12 = scmp.lt.s32.totalorder %s2028_s4, %s2028_s4 }
 0x71d   :  { %p2035_p13 = por %p2034_p12, %p2033_p11 }
 0x71f   :  { %p2036_p0 = pnand %p2035_p13, %p2029_p10 }
 0x721   :  { %2039 = shalt.err (!%p2036_p0)
}
 0x722   :  { %s2483_s10 = sld [smem:[#allocation30_spill]] }
 0x728   :  { %s2040_s24 = scalar_lea.hbm %s2483_s10, 512 }
 0x729   :  { %p2041_p1 = scmp.ne.s32.totalorder %s2483_s10, %s2040_s24  ;;  %p2044_p2 = scmp.lt.u32.totalorder %s2040_s24, %s2483_s10 }
 0x72b   :  { %p2046_p3 = pnand %p2044_p2, %p2041_p1 }
 0x72d   :  { %2049 = shalt.err (!%p2046_p3)
}
 0x72e   :  { %1373 = dma.vmem_to_hbm [thread:$0]  %s2396_s14, 512, %s2483_s10, [#allocation18], %s2078_s19, %s2078_s19, %s2079_s6  }
 0x72f   :  { %2058 = dma.done.wait [#allocation4], 256  }
 0x730   :  { %2059 = vsyncadd [#allocation4], 4294967040 }
 0x731   :  { %2060 = dma.done.wait [#allocation15], 1024  }
 0x732   :  { %2061 = vsyncadd [#allocation15], 4294966272 }
 0x733   :  { %2062 = dma.done.wait [#allocation18], 1024  }
 0x734   :  { %2063 = vsyncadd [#allocation18], 4294966272 }
 0x735   :  { %1389 = vsyncpa [#allocation3], 1 }
 0x736   :  { %1390 = vsyncpa [#allocation6], 1 }
 0x737   :  { %1391 = vsyncpa [#allocation9], 1 }
 0x738   :  { %1392 = vsyncpa [#allocation12], 1 }
 0x739   :  { %1393 = vsyncpa [#allocation4], 1 }
 0x73a   :  { %1394 = vsyncpa [#allocation15], 1 }
 0x73b   :  { %1395 = vsyncpa [#allocation18], 1 }

</bundles_post_ra>
